<compile_context>
chip_gen: v7x
topology: tpu7x:2x2x1
jax: 0.10.0
libtpu: 0.0.40
codegen_flags: <defaults>
</compile_context>

<pallas_src>
import math

import jax
import jax.numpy as jnp
from jax import lax
from jax.experimental import pallas as pl
from jax.experimental.pallas import tpu as pltpu

# ----------------------------- small config ---------------------------------
VOCAB = 100
MAX_LEN = 64
EMBED = 64
N_HEADS = 4
H_DIM = EMBED // N_HEADS
FFN = 4 * EMBED
N_LAYERS = 2
B = 2
S = 16
R = B * S                      # rows of the fused activation slab
EPS = 1e-5                     # nn.LayerNorm default
assert H_DIM & (H_DIM - 1) == 0, "head-mask uses a shift; H_DIM must be a power of 2"
_H_SHIFT = int(math.log2(H_DIM))


# ------------------------------ kernel helpers ------------------------------
def _gelu(x):
    # exact GELU (nn.GELU default): 0.5*x*(1+erf(x/sqrt(2)))
    return 0.5 * x * (1.0 + lax.erf(x * (1.0 / math.sqrt(2.0))))


def _layernorm(x, g, b):
    mu = jnp.mean(x, axis=-1, keepdims=True)
    var = jnp.mean((x - mu) ** 2, axis=-1, keepdims=True)
    return (x - mu) * lax.rsqrt(var + EPS) * g + b


# ------------------------------ fused kernel ---------------------------------
def transformer_kernel(x_ref, wqkv_ref, wo_ref, w1_ref, w2_ref,
                       vecs_ref, wd_ref, bd_ref, o_ref):
    x = x_ref[...]                                            # [R, E] embedded slab

    # Block-diagonal head mask [E, E]: 1 where columns i, j belong to the same head.
    # Built once from iota + shift (no extra DMA input, no integer division).
    i_hd = jnp.right_shift(lax.broadcasted_iota(jnp.int32, (EMBED, EMBED), 0), _H_SHIFT)
    j_hd = jnp.right_shift(lax.broadcasted_iota(jnp.int32, (EMBED, EMBED), 1), _H_SHIFT)
    head_mask = (i_hd == j_hd).astype(jnp.float32)

    for li in range(N_LAYERS):                                # static unroll, 2 layers
        w3 = wqkv_ref[li]                                     # [3, E, E], Wq pre-scaled
        wo = wo_ref[li]                                       # [E, E]
        w1 = w1_ref[li]                                       # [E, FFN]
        w2 = w2_ref[li]                                       # [FFN, E]
        vec = vecs_ref[li]                                    # [10, FFN] packed vectors
        bq = vec[0:1, 0:EMBED]
        bk = vec[1:2, 0:EMBED]
        bv = vec[2:3, 0:EMBED]
        bo = vec[3:4, 0:EMBED]
        g1 = vec[4:5, 0:EMBED]
        be1 = vec[5:6, 0:EMBED]
        bb2 = vec[6:7, 0:EMBED]
        g2 = vec[7:8, 0:EMBED]
        be2 = vec[8:9, 0:EMBED]
        bb1 = vec[9:10, :]                                    # [1, FFN]

        # Lane-aligned Q / K / V projections (scale 1/sqrt(h_dim) folded into Wq, bq).
        q = jnp.dot(x, w3[0], preferred_element_type=jnp.float32) + bq   # [R, E]
        k = jnp.dot(x, w3[1], preferred_element_type=jnp.float32) + bk
        v = jnp.dot(x, w3[2], preferred_element_type=jnp.float32) + bv

        # Multi-head attention.  Reference is called with mask=None, so there is NO
        # softmax on the scores -> attention is linear and per batch
        #   ctx[b] = Q[b] @ (head_mask ⊙ (K[b]^T V[b]))
        # i.e. two K/N=64 MXU matmuls per batch instead of 16 tiny per-head ops.
        # TODO(synk): the missing softmax is almost certainly a bug in the reference
        # model (mask=None path); kept for bit-faithful semantics.
        ctx_parts = []
        for b in range(B):                                    # static, B=2
            rs = slice(b * S, (b + 1) * S)
            ktv = lax.dot_general(k[rs, :], v[rs, :],
                                  (((0,), (0,)), ((), ())),
                                  preferred_element_type=jnp.float32)    # [E, E]
            ctx_parts.append(jnp.dot(q[rs, :], head_mask * ktv,
                                     preferred_element_type=jnp.float32))  # [S, E]
        ctx = jnp.concatenate(ctx_parts, axis=0)              # [R, E] (sublane concat)
        attn = jnp.dot(ctx, wo, preferred_element_type=jnp.float32) + bo

        # residual + LayerNorm 1
        x = _layernorm(attn + x, g1, be1)

        # feed-forward (ResAdd): w2(gelu(w1(x))); dropout = identity in eval
        h1 = _gelu(jnp.dot(x, w1, preferred_element_type=jnp.float32) + bb1)
        ff = jnp.dot(h1, w2, preferred_element_type=jnp.float32) + bb2

        # residual + LayerNorm 2
        x = _layernorm(ff + x, g2, be2)

    # ---------------- head: GELU + Linear(E -> 1), lane-dense output ----------
    xg = _gelu(x)                                             # [R, E]
    # y[0, r] = sum_e wd[0, e] * xg[r, e]  -> lane-dense [1, R] output row
    y = lax.dot_general(wd_ref[...], xg, (((1,), (1,)), ((), ())),
                        preferred_element_type=jnp.float32) + bd_ref[0, 0]
    o_ref[...] = y


# ------------------------------ wrapper --------------------------------------
_vmem = pl.BlockSpec(memory_space=pltpu.MemorySpace.VMEM)     # whole array in VMEM
_smem = pl.BlockSpec(memory_space=pltpu.MemorySpace.SMEM)     # scalar in SMEM


@jax.jit
def transformer_forward(ids, packed):
    # Embedding gather + positional add done by XLA in the wrapper (drops the vocab
    # DMA and the one-hot matmul from the latency-bound kernel). Dropout = identity.
    x0 = jnp.take(packed["vocab"], ids, axis=0) + packed["pos"][None, :, :]   # [B,S,E]
    x0 = x0.reshape(R, EMBED)
    # NOTE: gridless single invocation is the right shape for v5e/v6e (1 TC). On v7x
    # a grid=(B,) with dimension_semantics=("parallel",) would use both TCs, but at
    # this ~0.5 MB size the kernel is launch/latency bound, so we keep it gridless.
    flat = pl.pallas_call(
        transformer_kernel,
        out_shape=jax.ShapeDtypeStruct((1, R), jnp.float32),
        in_specs=[_vmem, _vmem, _vmem, _vmem, _vmem, _vmem, _vmem, _smem],
        out_specs=_vmem,
    )(x0, packed["wqkv"], packed["wo"], packed["w1"], packed["w2"],
      packed["vecs"], packed["wd"], packed["bd"])
    return flat.reshape(B, S, 1)                              # [B, S, 1]


# -------------------- parameters (PyTorch-form) + packing ---------------------
def init_params(key):
    def nrm(k, shape, sc=0.02):
        return (sc * jax.random.normal(k, shape)).astype(jnp.float32)

    keys = jax.random.split(key, 4 + N_LAYERS)
    p = {
        "vocab": nrm(keys[0], (VOCAB, EMBED)),
        "pos": nrm(keys[1], (MAX_LEN, EMBED)),
        "wd": nrm(keys[2], (1, EMBED)),                       # decoder Linear(E,1) as a row
        "bd": nrm(keys[3], (1, 1)),
        "layers": [],
    }
    for li in range(N_LAYERS):
        lk = jax.random.split(keys[4 + li], 12)
        p["layers"].append({
            "wq": nrm(lk[0], (EMBED, EMBED)), "bq": nrm(lk[1], (EMBED,)),
            "wk": nrm(lk[2], (EMBED, EMBED)), "bk": nrm(lk[3], (EMBED,)),
            "wv": nrm(lk[4], (EMBED, EMBED)), "bv": nrm(lk[5], (EMBED,)),
            "wo": nrm(lk[6], (EMBED, EMBED)), "bo": nrm(lk[7], (EMBED,)),
            "g1": jnp.ones((EMBED,), jnp.float32),
            "be1": jnp.zeros((EMBED,), jnp.float32),
            "w1": nrm(lk[8], (EMBED, FFN)), "bb1": nrm(lk[9], (FFN,)),
            "w2": nrm(lk[10], (FFN, EMBED)), "bb2": nrm(lk[11], (EMBED,)),
            "g2": jnp.ones((EMBED,), jnp.float32),
            "be2": jnp.zeros((EMBED,), jnp.float32),
        })
    return p


def pack_params(p):
    """Repack PyTorch-form params into the kernel-ready layout."""
    scale = 1.0 / math.sqrt(H_DIM)

    def row(v):                                               # [E] -> [FFN] lane-0 aligned
        return jnp.pad(v, (0, FFN - v.shape[0]))

    wqkv, wo, w1, w2, vecs = [], [], [], [], []
    for L in p["layers"]:
        wqkv.append(jnp.stack([L["wq"] * scale, L["wk"], L["wv"]]))       # [3, E, E]
        wo.append(L["wo"]); w1.append(L["w1"]); w2.append(L["w2"])
        vecs.append(jnp.stack([row(L["bq"] * scale), row(L["bk"]), row(L["bv"]),
                               row(L["bo"]), row(L["g1"]), row(L["be1"]),
                               row(L["bb2"]), row(L["g2"]), row(L["be2"]),
                               L["bb1"]]))                                 # [10, FFN]
    return {
        "vocab": p["vocab"],
        "pos": p["pos"][:S],                                  # rows 0..S-1 (arange(S))
        "wqkv": jnp.stack(wqkv),                              # [L, 3, E, E]
        "wo": jnp.stack(wo),                                  # [L, E, E]
        "w1": jnp.stack(w1),                                  # [L, E, FFN]
        "w2": jnp.stack(w2),                                  # [L, FFN, E]
        "vecs": jnp.stack(vecs),                              # [L, 10, FFN]
        "wd": p["wd"],                                        # [1, E]
        "bd": p["bd"],                                        # [1, 1] (SMEM)
    }


# -------------------- pure-JAX reference (mirrors the PyTorch model) ----------
def _layernorm_ref(x, g, b):
    mu = jnp.mean(x, axis=-1, keepdims=True)
    var = jnp.mean((x - mu) ** 2, axis=-1, keepdims=True)
    return (x - mu) / jnp.sqrt(var + EPS) * g + b


def reference_forward(ids, p):
    b_, s_ = ids.shape
    x = p["vocab"][ids] + p["pos"][jnp.arange(s_)][None, :, :]
    for L in p["layers"]:
        res = x
        q = x @ L["wq"] + L["bq"]
        k = x @ L["wk"] + L["bk"]
        v = x @ L["wv"] + L["bv"]

        def heads(t):
            return jnp.transpose(t.reshape(b_, s_, N_HEADS, H_DIM), (0, 2, 1, 3))

        qh, kh, vh = heads(q), heads(k), heads(v)
        scores = qh @ jnp.transpose(kh, (0, 1, 3, 2)) / math.sqrt(H_DIM)
        # mask=None path of the reference: no softmax; dropout identity (eval)
        ctx = jnp.transpose(scores @ vh, (0, 2, 1, 3)).reshape(b_, s_, EMBED)
        x = _layernorm_ref(ctx @ L["wo"] + L["bo"] + res, L["g1"], L["be1"])
        res = x
        h = jax.nn.gelu(x @ L["w1"] + L["bb1"], approximate=False)
        x = _layernorm_ref(h @ L["w2"] + L["bb2"] + res, L["g2"], L["be2"])
    x = jax.nn.gelu(x, approximate=False)
    return x @ p["wd"].T + p["bd"]


# ------------------------------ main ------------------------------------------
if __name__ == "__main__":
    key = jax.random.PRNGKey(0)
    k_ids, k_par = jax.random.split(key)
    ids = jax.random.randint(k_ids, (B, S), 0, VOCAB, dtype=jnp.int32)
    params = init_params(k_par)
    packed = pack_params(params)

    out = jax.block_until_ready(transformer_forward(ids, packed))
    assert out.shape == (B, S, 1) and out.dtype == jnp.float32

    ref = jax.block_until_ready(reference_forward(ids, params))
    # Loose tolerance: kernel re-associates the (linear) attention and MXU/XLA matmul
    # precisions differ slightly; structural errors would be orders of magnitude bigger.
    assert bool(jnp.allclose(out, ref, rtol=5e-2, atol=5e-3)), (
        "kernel/reference mismatch: max abs err = "
        + str(float(jnp.max(jnp.abs(out - ref)))))
    print("KERNEL_OK")
</pallas_src>

<mosaic_0001>
module attributes {stable_mosaic.version = 11 : i64} {
  func.func @transformer_kernel(%arg0: memref<32x64xf32, #tpu.memory_space<vmem>>, %arg1: memref<2x3x64x64xf32, #tpu.memory_space<vmem>>, %arg2: memref<2x64x64xf32, #tpu.memory_space<vmem>>, %arg3: memref<2x64x256xf32, #tpu.memory_space<vmem>>, %arg4: memref<2x256x64xf32, #tpu.memory_space<vmem>>, %arg5: memref<2x10x256xf32, #tpu.memory_space<vmem>>, %arg6: memref<1x64xf32, #tpu.memory_space<vmem>>, %arg7: memref<1x1xf32, #tpu.memory_space<smem>>, %arg8: memref<1x32xf32, #tpu.memory_space<vmem>>) attributes {dimension_semantics = [], scalar_prefetch = 0 : i64, scratch_operands = 0 : i64, tpu.core_type = #tpu.core_type<tc>} {
    %c0 = arith.constant 0 : index
    %c0_0 = arith.constant 0 : index
    %0 = vector.load %arg0[%c0, %c0_0] : memref<32x64xf32, #tpu.memory_space<vmem>>, vector<32x64xf32>
    %1 = tpu.iota {dimensions = array<i32: 0>} : vector<64x64xi32>
    %c4_i32 = arith.constant 4 : i32
    %2 = vector.broadcast %c4_i32 : i32 to vector<64x64xi32>
    %3 = arith.shrsi %1, %2 : vector<64x64xi32>
    %4 = tpu.iota {dimensions = array<i32: 1>} : vector<64x64xi32>
    %c4_i32_1 = arith.constant 4 : i32
    %5 = vector.broadcast %c4_i32_1 : i32 to vector<64x64xi32>
    %6 = arith.shrsi %4, %5 : vector<64x64xi32>
    %7 = arith.cmpi eq, %3, %6 : vector<64x64xi32>
    %8 = arith.extui %7 : vector<64x64xi1> to vector<64x64xi32>
    %9 = arith.sitofp %8 : vector<64x64xi32> to vector<64x64xf32>
    %c0_2 = arith.constant 0 : index
    %c0_3 = arith.constant 0 : index
    %c0_4 = arith.constant 0 : index
    %c0_5 = arith.constant 0 : index
    %10 = vector.load %arg1[%c0_2, %c0_3, %c0_4, %c0_5] : memref<2x3x64x64xf32, #tpu.memory_space<vmem>>, vector<1x3x64x64xf32>
    %11 = vector.shape_cast %10 : vector<1x3x64x64xf32> to vector<3x64x64xf32>
    %c0_6 = arith.constant 0 : index
    %c0_7 = arith.constant 0 : index
    %c0_8 = arith.constant 0 : index
    %12 = vector.load %arg2[%c0_6, %c0_7, %c0_8] : memref<2x64x64xf32, #tpu.memory_space<vmem>>, vector<1x64x64xf32>
    %13 = vector.shape_cast %12 : vector<1x64x64xf32> to vector<64x64xf32>
    %c0_9 = arith.constant 0 : index
    %c0_10 = arith.constant 0 : index
    %c0_11 = arith.constant 0 : index
    %14 = vector.load %arg3[%c0_9, %c0_10, %c0_11] : memref<2x64x256xf32, #tpu.memory_space<vmem>>, vector<1x64x256xf32>
    %15 = vector.shape_cast %14 : vector<1x64x256xf32> to vector<64x256xf32>
    %c0_12 = arith.constant 0 : index
    %c0_13 = arith.constant 0 : index
    %c0_14 = arith.constant 0 : index
    %16 = vector.load %arg4[%c0_12, %c0_13, %c0_14] : memref<2x256x64xf32, #tpu.memory_space<vmem>>, vector<1x256x64xf32>
    %17 = vector.shape_cast %16 : vector<1x256x64xf32> to vector<256x64xf32>
    %c0_15 = arith.constant 0 : index
    %c0_16 = arith.constant 0 : index
    %c0_17 = arith.constant 0 : index
    %18 = vector.load %arg5[%c0_15, %c0_16, %c0_17] : memref<2x10x256xf32, #tpu.memory_space<vmem>>, vector<1x10x256xf32>
    %19 = vector.shape_cast %18 : vector<1x10x256xf32> to vector<10x256xf32>
    %20 = vector.extract_strided_slice %19 {offsets = [0, 0], sizes = [1, 64], strides = [1, 1]} : vector<10x256xf32> to vector<1x64xf32>
    %21 = vector.extract_strided_slice %19 {offsets = [1, 0], sizes = [1, 64], strides = [1, 1]} : vector<10x256xf32> to vector<1x64xf32>
    %22 = vector.extract_strided_slice %19 {offsets = [2, 0], sizes = [1, 64], strides = [1, 1]} : vector<10x256xf32> to vector<1x64xf32>
    %23 = vector.extract_strided_slice %19 {offsets = [3, 0], sizes = [1, 64], strides = [1, 1]} : vector<10x256xf32> to vector<1x64xf32>
    %24 = vector.extract_strided_slice %19 {offsets = [4, 0], sizes = [1, 64], strides = [1, 1]} : vector<10x256xf32> to vector<1x64xf32>
    %25 = vector.extract_strided_slice %19 {offsets = [5, 0], sizes = [1, 64], strides = [1, 1]} : vector<10x256xf32> to vector<1x64xf32>
    %26 = vector.extract_strided_slice %19 {offsets = [6, 0], sizes = [1, 64], strides = [1, 1]} : vector<10x256xf32> to vector<1x64xf32>
    %27 = vector.extract_strided_slice %19 {offsets = [7, 0], sizes = [1, 64], strides = [1, 1]} : vector<10x256xf32> to vector<1x64xf32>
    %28 = vector.extract_strided_slice %19 {offsets = [8, 0], sizes = [1, 64], strides = [1, 1]} : vector<10x256xf32> to vector<1x64xf32>
    %29 = vector.extract_strided_slice %19 {offsets = [9, 0], sizes = [1, 256], strides = [1, 1]} : vector<10x256xf32> to vector<1x256xf32>
    %30 = vector.extract_strided_slice %11 {offsets = [0, 0, 0], sizes = [1, 64, 64], strides = [1, 1, 1]} : vector<3x64x64xf32> to vector<1x64x64xf32>
    %31 = vector.shape_cast %30 : vector<1x64x64xf32> to vector<64x64xf32>
    %cst = arith.constant dense<0.000000e+00> : vector<32x64xf32>
    %32 = tpu.matmul %0, %31, %cst {dimension_numbers = #tpu.dot_dimension_numbers<[1], [0], [0], [1], [0, 0, 1, 1], [], []>} : vector<32x64xf32>, vector<64x64xf32>, vector<32x64xf32> -> vector<32x64xf32>
    %33 = vector.broadcast %20 : vector<1x64xf32> to vector<32x64xf32>
    %34 = arith.addf %32, %33 : vector<32x64xf32>
    %35 = vector.extract_strided_slice %11 {offsets = [1, 0, 0], sizes = [1, 64, 64], strides = [1, 1, 1]} : vector<3x64x64xf32> to vector<1x64x64xf32>
    %36 = vector.shape_cast %35 : vector<1x64x64xf32> to vector<64x64xf32>
    %cst_18 = arith.constant dense<0.000000e+00> : vector<32x64xf32>
    %37 = tpu.matmul %0, %36, %cst_18 {dimension_numbers = #tpu.dot_dimension_numbers<[1], [0], [0], [1], [0, 0, 1, 1], [], []>} : vector<32x64xf32>, vector<64x64xf32>, vector<32x64xf32> -> vector<32x64xf32>
    %38 = vector.broadcast %21 : vector<1x64xf32> to vector<32x64xf32>
    %39 = arith.addf %37, %38 : vector<32x64xf32>
    %40 = vector.extract_strided_slice %11 {offsets = [2, 0, 0], sizes = [1, 64, 64], strides = [1, 1, 1]} : vector<3x64x64xf32> to vector<1x64x64xf32>
    %41 = vector.shape_cast %40 : vector<1x64x64xf32> to vector<64x64xf32>
    %cst_19 = arith.constant dense<0.000000e+00> : vector<32x64xf32>
    %42 = tpu.matmul %0, %41, %cst_19 {dimension_numbers = #tpu.dot_dimension_numbers<[1], [0], [0], [1], [0, 0, 1, 1], [], []>} : vector<32x64xf32>, vector<64x64xf32>, vector<32x64xf32> -> vector<32x64xf32>
    %43 = vector.broadcast %22 : vector<1x64xf32> to vector<32x64xf32>
    %44 = arith.addf %42, %43 : vector<32x64xf32>
    %45 = vector.extract_strided_slice %39 {offsets = [0, 0], sizes = [16, 64], strides = [1, 1]} : vector<32x64xf32> to vector<16x64xf32>
    %46 = vector.extract_strided_slice %44 {offsets = [0, 0], sizes = [16, 64], strides = [1, 1]} : vector<32x64xf32> to vector<16x64xf32>
    %cst_20 = arith.constant dense<0.000000e+00> : vector<64x64xf32>
    %47 = tpu.matmul %45, %46, %cst_20 {dimension_numbers = #tpu.dot_dimension_numbers<[0], [0], [1], [1], [0, 1, 1, 1], [], []>} : vector<16x64xf32>, vector<16x64xf32>, vector<64x64xf32> -> vector<64x64xf32>
    %48 = vector.extract_strided_slice %34 {offsets = [0, 0], sizes = [16, 64], strides = [1, 1]} : vector<32x64xf32> to vector<16x64xf32>
    %49 = arith.mulf %9, %47 : vector<64x64xf32>
    %cst_21 = arith.constant dense<0.000000e+00> : vector<16x64xf32>
    %50 = tpu.matmul %48, %49, %cst_21 {dimension_numbers = #tpu.dot_dimension_numbers<[1], [0], [0], [1], [0, 0, 1, 1], [], []>} : vector<16x64xf32>, vector<64x64xf32>, vector<16x64xf32> -> vector<16x64xf32>
    %51 = vector.extract_strided_slice %39 {offsets = [16, 0], sizes = [16, 64], strides = [1, 1]} : vector<32x64xf32> to vector<16x64xf32>
    %52 = vector.extract_strided_slice %44 {offsets = [16, 0], sizes = [16, 64], strides = [1, 1]} : vector<32x64xf32> to vector<16x64xf32>
    %cst_22 = arith.constant dense<0.000000e+00> : vector<64x64xf32>
    %53 = tpu.matmul %51, %52, %cst_22 {dimension_numbers = #tpu.dot_dimension_numbers<[0], [0], [1], [1], [0, 1, 1, 1], [], []>} : vector<16x64xf32>, vector<16x64xf32>, vector<64x64xf32> -> vector<64x64xf32>
    %54 = vector.extract_strided_slice %34 {offsets = [16, 0], sizes = [16, 64], strides = [1, 1]} : vector<32x64xf32> to vector<16x64xf32>
    %55 = arith.mulf %9, %53 : vector<64x64xf32>
    %cst_23 = arith.constant dense<0.000000e+00> : vector<16x64xf32>
    %56 = tpu.matmul %54, %55, %cst_23 {dimension_numbers = #tpu.dot_dimension_numbers<[1], [0], [0], [1], [0, 0, 1, 1], [], []>} : vector<16x64xf32>, vector<64x64xf32>, vector<16x64xf32> -> vector<16x64xf32>
    %57 = tpu.concatenate %50, %56 in 0 : vector<16x64xf32>, vector<16x64xf32> -> vector<32x64xf32>
    %cst_24 = arith.constant dense<0.000000e+00> : vector<32x64xf32>
    %58 = tpu.matmul %57, %13, %cst_24 {dimension_numbers = #tpu.dot_dimension_numbers<[1], [0], [0], [1], [0, 0, 1, 1], [], []>} : vector<32x64xf32>, vector<64x64xf32>, vector<32x64xf32> -> vector<32x64xf32>
    %59 = vector.broadcast %23 : vector<1x64xf32> to vector<32x64xf32>
    %60 = arith.addf %58, %59 : vector<32x64xf32>
    %61 = arith.addf %60, %0 : vector<32x64xf32>
    %cst_25 = arith.constant dense<0.000000e+00> : vector<32xf32>
    %62 = vector.multi_reduction <add>, %61, %cst_25 [1] : vector<32x64xf32> to vector<32xf32>
    %63 = vector.shape_cast %62 : vector<32xf32> to vector<32x1xf32>
    %cst_26 = arith.constant 6.400000e+01 : f32
    %64 = vector.broadcast %cst_26 : f32 to vector<32x1xf32>
    %65 = arith.divf %63, %64 : vector<32x1xf32>
    %66 = vector.broadcast %65 : vector<32x1xf32> to vector<32x64xf32>
    %67 = arith.subf %61, %66 : vector<32x64xf32>
    %68 = arith.mulf %67, %67 : vector<32x64xf32>
    %cst_27 = arith.constant dense<0.000000e+00> : vector<32xf32>
    %69 = vector.multi_reduction <add>, %68, %cst_27 [1] : vector<32x64xf32> to vector<32xf32>
    %70 = vector.shape_cast %69 : vector<32xf32> to vector<32x1xf32>
    %cst_28 = arith.constant 6.400000e+01 : f32
    %71 = vector.broadcast %cst_28 : f32 to vector<32x1xf32>
    %72 = arith.divf %70, %71 : vector<32x1xf32>
    %73 = vector.broadcast %65 : vector<32x1xf32> to vector<32x64xf32>
    %74 = arith.subf %61, %73 : vector<32x64xf32>
    %cst_29 = arith.constant 9.99999974E-6 : f32
    %75 = vector.broadcast %cst_29 : f32 to vector<32x1xf32>
    %76 = arith.addf %72, %75 : vector<32x1xf32>
    %77 = math.rsqrt %76 : vector<32x1xf32>
    %78 = vector.broadcast %77 : vector<32x1xf32> to vector<32x64xf32>
    %79 = arith.mulf %74, %78 : vector<32x64xf32>
    %80 = vector.broadcast %24 : vector<1x64xf32> to vector<32x64xf32>
    %81 = arith.mulf %79, %80 : vector<32x64xf32>
    %82 = vector.broadcast %25 : vector<1x64xf32> to vector<32x64xf32>
    %83 = arith.addf %81, %82 : vector<32x64xf32>
    %cst_30 = arith.constant dense<0.000000e+00> : vector<32x256xf32>
    %84 = tpu.matmul %83, %15, %cst_30 {dimension_numbers = #tpu.dot_dimension_numbers<[1], [0], [0], [1], [0, 0, 1, 1], [], []>} : vector<32x64xf32>, vector<64x256xf32>, vector<32x256xf32> -> vector<32x256xf32>
    %85 = vector.broadcast %29 : vector<1x256xf32> to vector<32x256xf32>
    %86 = arith.addf %84, %85 : vector<32x256xf32>
    %cst_31 = arith.constant 5.000000e-01 : f32
    %87 = vector.broadcast %cst_31 : f32 to vector<32x256xf32>
    %88 = arith.mulf %87, %86 : vector<32x256xf32>
    %cst_32 = arith.constant 0.707106769 : f32
    %89 = vector.broadcast %cst_32 : f32 to vector<32x256xf32>
    %90 = arith.mulf %86, %89 : vector<32x256xf32>
    %91 = math.erf %90 : vector<32x256xf32>
    %cst_33 = arith.constant 1.000000e+00 : f32
    %92 = vector.broadcast %cst_33 : f32 to vector<32x256xf32>
    %93 = arith.addf %92, %91 : vector<32x256xf32>
    %94 = arith.mulf %88, %93 : vector<32x256xf32>
    %cst_34 = arith.constant dense<0.000000e+00> : vector<32x64xf32>
    %95 = tpu.matmul %94, %17, %cst_34 {dimension_numbers = #tpu.dot_dimension_numbers<[1], [0], [0], [1], [0, 0, 1, 1], [], []>} : vector<32x256xf32>, vector<256x64xf32>, vector<32x64xf32> -> vector<32x64xf32>
    %96 = vector.broadcast %26 : vector<1x64xf32> to vector<32x64xf32>
    %97 = arith.addf %95, %96 : vector<32x64xf32>
    %98 = arith.addf %97, %83 : vector<32x64xf32>
    %cst_35 = arith.constant dense<0.000000e+00> : vector<32xf32>
    %99 = vector.multi_reduction <add>, %98, %cst_35 [1] : vector<32x64xf32> to vector<32xf32>
    %100 = vector.shape_cast %99 : vector<32xf32> to vector<32x1xf32>
    %cst_36 = arith.constant 6.400000e+01 : f32
    %101 = vector.broadcast %cst_36 : f32 to vector<32x1xf32>
    %102 = arith.divf %100, %101 : vector<32x1xf32>
    %103 = vector.broadcast %102 : vector<32x1xf32> to vector<32x64xf32>
    %104 = arith.subf %98, %103 : vector<32x64xf32>
    %105 = arith.mulf %104, %104 : vector<32x64xf32>
    %cst_37 = arith.constant dense<0.000000e+00> : vector<32xf32>
    %106 = vector.multi_reduction <add>, %105, %cst_37 [1] : vector<32x64xf32> to vector<32xf32>
    %107 = vector.shape_cast %106 : vector<32xf32> to vector<32x1xf32>
    %cst_38 = arith.constant 6.400000e+01 : f32
    %108 = vector.broadcast %cst_38 : f32 to vector<32x1xf32>
    %109 = arith.divf %107, %108 : vector<32x1xf32>
    %110 = vector.broadcast %102 : vector<32x1xf32> to vector<32x64xf32>
    %111 = arith.subf %98, %110 : vector<32x64xf32>
    %cst_39 = arith.constant 9.99999974E-6 : f32
    %112 = vector.broadcast %cst_39 : f32 to vector<32x1xf32>
    %113 = arith.addf %109, %112 : vector<32x1xf32>
    %114 = math.rsqrt %113 : vector<32x1xf32>
    %115 = vector.broadcast %114 : vector<32x1xf32> to vector<32x64xf32>
    %116 = arith.mulf %111, %115 : vector<32x64xf32>
    %117 = vector.broadcast %27 : vector<1x64xf32> to vector<32x64xf32>
    %118 = arith.mulf %116, %117 : vector<32x64xf32>
    %119 = vector.broadcast %28 : vector<1x64xf32> to vector<32x64xf32>
    %120 = arith.addf %118, %119 : vector<32x64xf32>
    %c1 = arith.constant 1 : index
    %c0_40 = arith.constant 0 : index
    %c0_41 = arith.constant 0 : index
    %c0_42 = arith.constant 0 : index
    %121 = vector.load %arg1[%c1, %c0_40, %c0_41, %c0_42] : memref<2x3x64x64xf32, #tpu.memory_space<vmem>>, vector<1x3x64x64xf32>
    %122 = vector.shape_cast %121 : vector<1x3x64x64xf32> to vector<3x64x64xf32>
    %c1_43 = arith.constant 1 : index
    %c0_44 = arith.constant 0 : index
    %c0_45 = arith.constant 0 : index
    %123 = vector.load %arg2[%c1_43, %c0_44, %c0_45] : memref<2x64x64xf32, #tpu.memory_space<vmem>>, vector<1x64x64xf32>
    %124 = vector.shape_cast %123 : vector<1x64x64xf32> to vector<64x64xf32>
    %c1_46 = arith.constant 1 : index
    %c0_47 = arith.constant 0 : index
    %c0_48 = arith.constant 0 : index
    %125 = vector.load %arg3[%c1_46, %c0_47, %c0_48] : memref<2x64x256xf32, #tpu.memory_space<vmem>>, vector<1x64x256xf32>
    %126 = vector.shape_cast %125 : vector<1x64x256xf32> to vector<64x256xf32>
    %c1_49 = arith.constant 1 : index
    %c0_50 = arith.constant 0 : index
    %c0_51 = arith.constant 0 : index
    %127 = vector.load %arg4[%c1_49, %c0_50, %c0_51] : memref<2x256x64xf32, #tpu.memory_space<vmem>>, vector<1x256x64xf32>
    %128 = vector.shape_cast %127 : vector<1x256x64xf32> to vector<256x64xf32>
    %c1_52 = arith.constant 1 : index
    %c0_53 = arith.constant 0 : index
    %c0_54 = arith.constant 0 : index
    %129 = vector.load %arg5[%c1_52, %c0_53, %c0_54] : memref<2x10x256xf32, #tpu.memory_space<vmem>>, vector<1x10x256xf32>
    %130 = vector.shape_cast %129 : vector<1x10x256xf32> to vector<10x256xf32>
    %131 = vector.extract_strided_slice %130 {offsets = [0, 0], sizes = [1, 64], strides = [1, 1]} : vector<10x256xf32> to vector<1x64xf32>
    %132 = vector.extract_strided_slice %130 {offsets = [1, 0], sizes = [1, 64], strides = [1, 1]} : vector<10x256xf32> to vector<1x64xf32>
    %133 = vector.extract_strided_slice %130 {offsets = [2, 0], sizes = [1, 64], strides = [1, 1]} : vector<10x256xf32> to vector<1x64xf32>
    %134 = vector.extract_strided_slice %130 {offsets = [3, 0], sizes = [1, 64], strides = [1, 1]} : vector<10x256xf32> to vector<1x64xf32>
    %135 = vector.extract_strided_slice %130 {offsets = [4, 0], sizes = [1, 64], strides = [1, 1]} : vector<10x256xf32> to vector<1x64xf32>
    %136 = vector.extract_strided_slice %130 {offsets = [5, 0], sizes = [1, 64], strides = [1, 1]} : vector<10x256xf32> to vector<1x64xf32>
    %137 = vector.extract_strided_slice %130 {offsets = [6, 0], sizes = [1, 64], strides = [1, 1]} : vector<10x256xf32> to vector<1x64xf32>
    %138 = vector.extract_strided_slice %130 {offsets = [7, 0], sizes = [1, 64], strides = [1, 1]} : vector<10x256xf32> to vector<1x64xf32>
    %139 = vector.extract_strided_slice %130 {offsets = [8, 0], sizes = [1, 64], strides = [1, 1]} : vector<10x256xf32> to vector<1x64xf32>
    %140 = vector.extract_strided_slice %130 {offsets = [9, 0], sizes = [1, 256], strides = [1, 1]} : vector<10x256xf32> to vector<1x256xf32>
    %141 = vector.extract_strided_slice %122 {offsets = [0, 0, 0], sizes = [1, 64, 64], strides = [1, 1, 1]} : vector<3x64x64xf32> to vector<1x64x64xf32>
    %142 = vector.shape_cast %141 : vector<1x64x64xf32> to vector<64x64xf32>
    %cst_55 = arith.constant dense<0.000000e+00> : vector<32x64xf32>
    %143 = tpu.matmul %120, %142, %cst_55 {dimension_numbers = #tpu.dot_dimension_numbers<[1], [0], [0], [1], [0, 0, 1, 1], [], []>} : vector<32x64xf32>, vector<64x64xf32>, vector<32x64xf32> -> vector<32x64xf32>
    %144 = vector.broadcast %131 : vector<1x64xf32> to vector<32x64xf32>
    %145 = arith.addf %143, %144 : vector<32x64xf32>
    %146 = vector.extract_strided_slice %122 {offsets = [1, 0, 0], sizes = [1, 64, 64], strides = [1, 1, 1]} : vector<3x64x64xf32> to vector<1x64x64xf32>
    %147 = vector.shape_cast %146 : vector<1x64x64xf32> to vector<64x64xf32>
    %cst_56 = arith.constant dense<0.000000e+00> : vector<32x64xf32>
    %148 = tpu.matmul %120, %147, %cst_56 {dimension_numbers = #tpu.dot_dimension_numbers<[1], [0], [0], [1], [0, 0, 1, 1], [], []>} : vector<32x64xf32>, vector<64x64xf32>, vector<32x64xf32> -> vector<32x64xf32>
    %149 = vector.broadcast %132 : vector<1x64xf32> to vector<32x64xf32>
    %150 = arith.addf %148, %149 : vector<32x64xf32>
    %151 = vector.extract_strided_slice %122 {offsets = [2, 0, 0], sizes = [1, 64, 64], strides = [1, 1, 1]} : vector<3x64x64xf32> to vector<1x64x64xf32>
    %152 = vector.shape_cast %151 : vector<1x64x64xf32> to vector<64x64xf32>
    %cst_57 = arith.constant dense<0.000000e+00> : vector<32x64xf32>
    %153 = tpu.matmul %120, %152, %cst_57 {dimension_numbers = #tpu.dot_dimension_numbers<[1], [0], [0], [1], [0, 0, 1, 1], [], []>} : vector<32x64xf32>, vector<64x64xf32>, vector<32x64xf32> -> vector<32x64xf32>
    %154 = vector.broadcast %133 : vector<1x64xf32> to vector<32x64xf32>
    %155 = arith.addf %153, %154 : vector<32x64xf32>
    %156 = vector.extract_strided_slice %150 {offsets = [0, 0], sizes = [16, 64], strides = [1, 1]} : vector<32x64xf32> to vector<16x64xf32>
    %157 = vector.extract_strided_slice %155 {offsets = [0, 0], sizes = [16, 64], strides = [1, 1]} : vector<32x64xf32> to vector<16x64xf32>
    %cst_58 = arith.constant dense<0.000000e+00> : vector<64x64xf32>
    %158 = tpu.matmul %156, %157, %cst_58 {dimension_numbers = #tpu.dot_dimension_numbers<[0], [0], [1], [1], [0, 1, 1, 1], [], []>} : vector<16x64xf32>, vector<16x64xf32>, vector<64x64xf32> -> vector<64x64xf32>
    %159 = vector.extract_strided_slice %145 {offsets = [0, 0], sizes = [16, 64], strides = [1, 1]} : vector<32x64xf32> to vector<16x64xf32>
    %160 = arith.mulf %9, %158 : vector<64x64xf32>
    %cst_59 = arith.constant dense<0.000000e+00> : vector<16x64xf32>
    %161 = tpu.matmul %159, %160, %cst_59 {dimension_numbers = #tpu.dot_dimension_numbers<[1], [0], [0], [1], [0, 0, 1, 1], [], []>} : vector<16x64xf32>, vector<64x64xf32>, vector<16x64xf32> -> vector<16x64xf32>
    %162 = vector.extract_strided_slice %150 {offsets = [16, 0], sizes = [16, 64], strides = [1, 1]} : vector<32x64xf32> to vector<16x64xf32>
    %163 = vector.extract_strided_slice %155 {offsets = [16, 0], sizes = [16, 64], strides = [1, 1]} : vector<32x64xf32> to vector<16x64xf32>
    %cst_60 = arith.constant dense<0.000000e+00> : vector<64x64xf32>
    %164 = tpu.matmul %162, %163, %cst_60 {dimension_numbers = #tpu.dot_dimension_numbers<[0], [0], [1], [1], [0, 1, 1, 1], [], []>} : vector<16x64xf32>, vector<16x64xf32>, vector<64x64xf32> -> vector<64x64xf32>
    %165 = vector.extract_strided_slice %145 {offsets = [16, 0], sizes = [16, 64], strides = [1, 1]} : vector<32x64xf32> to vector<16x64xf32>
    %166 = arith.mulf %9, %164 : vector<64x64xf32>
    %cst_61 = arith.constant dense<0.000000e+00> : vector<16x64xf32>
    %167 = tpu.matmul %165, %166, %cst_61 {dimension_numbers = #tpu.dot_dimension_numbers<[1], [0], [0], [1], [0, 0, 1, 1], [], []>} : vector<16x64xf32>, vector<64x64xf32>, vector<16x64xf32> -> vector<16x64xf32>
    %168 = tpu.concatenate %161, %167 in 0 : vector<16x64xf32>, vector<16x64xf32> -> vector<32x64xf32>
    %cst_62 = arith.constant dense<0.000000e+00> : vector<32x64xf32>
    %169 = tpu.matmul %168, %124, %cst_62 {dimension_numbers = #tpu.dot_dimension_numbers<[1], [0], [0], [1], [0, 0, 1, 1], [], []>} : vector<32x64xf32>, vector<64x64xf32>, vector<32x64xf32> -> vector<32x64xf32>
    %170 = vector.broadcast %134 : vector<1x64xf32> to vector<32x64xf32>
    %171 = arith.addf %169, %170 : vector<32x64xf32>
    %172 = arith.addf %171, %120 : vector<32x64xf32>
    %cst_63 = arith.constant dense<0.000000e+00> : vector<32xf32>
    %173 = vector.multi_reduction <add>, %172, %cst_63 [1] : vector<32x64xf32> to vector<32xf32>
    %174 = vector.shape_cast %173 : vector<32xf32> to vector<32x1xf32>
    %cst_64 = arith.constant 6.400000e+01 : f32
    %175 = vector.broadcast %cst_64 : f32 to vector<32x1xf32>
    %176 = arith.divf %174, %175 : vector<32x1xf32>
    %177 = vector.broadcast %176 : vector<32x1xf32> to vector<32x64xf32>
    %178 = arith.subf %172, %177 : vector<32x64xf32>
    %179 = arith.mulf %178, %178 : vector<32x64xf32>
    %cst_65 = arith.constant dense<0.000000e+00> : vector<32xf32>
    %180 = vector.multi_reduction <add>, %179, %cst_65 [1] : vector<32x64xf32> to vector<32xf32>
    %181 = vector.shape_cast %180 : vector<32xf32> to vector<32x1xf32>
    %cst_66 = arith.constant 6.400000e+01 : f32
    %182 = vector.broadcast %cst_66 : f32 to vector<32x1xf32>
    %183 = arith.divf %181, %182 : vector<32x1xf32>
    %184 = vector.broadcast %176 : vector<32x1xf32> to vector<32x64xf32>
    %185 = arith.subf %172, %184 : vector<32x64xf32>
    %cst_67 = arith.constant 9.99999974E-6 : f32
    %186 = vector.broadcast %cst_67 : f32 to vector<32x1xf32>
    %187 = arith.addf %183, %186 : vector<32x1xf32>
    %188 = math.rsqrt %187 : vector<32x1xf32>
    %189 = vector.broadcast %188 : vector<32x1xf32> to vector<32x64xf32>
    %190 = arith.mulf %185, %189 : vector<32x64xf32>
    %191 = vector.broadcast %135 : vector<1x64xf32> to vector<32x64xf32>
    %192 = arith.mulf %190, %191 : vector<32x64xf32>
    %193 = vector.broadcast %136 : vector<1x64xf32> to vector<32x64xf32>
    %194 = arith.addf %192, %193 : vector<32x64xf32>
    %cst_68 = arith.constant dense<0.000000e+00> : vector<32x256xf32>
    %195 = tpu.matmul %194, %126, %cst_68 {dimension_numbers = #tpu.dot_dimension_numbers<[1], [0], [0], [1], [0, 0, 1, 1], [], []>} : vector<32x64xf32>, vector<64x256xf32>, vector<32x256xf32> -> vector<32x256xf32>
    %196 = vector.broadcast %140 : vector<1x256xf32> to vector<32x256xf32>
    %197 = arith.addf %195, %196 : vector<32x256xf32>
    %cst_69 = arith.constant 5.000000e-01 : f32
    %198 = vector.broadcast %cst_69 : f32 to vector<32x256xf32>
    %199 = arith.mulf %198, %197 : vector<32x256xf32>
    %cst_70 = arith.constant 0.707106769 : f32
    %200 = vector.broadcast %cst_70 : f32 to vector<32x256xf32>
    %201 = arith.mulf %197, %200 : vector<32x256xf32>
    %202 = math.erf %201 : vector<32x256xf32>
    %cst_71 = arith.constant 1.000000e+00 : f32
    %203 = vector.broadcast %cst_71 : f32 to vector<32x256xf32>
    %204 = arith.addf %203, %202 : vector<32x256xf32>
    %205 = arith.mulf %199, %204 : vector<32x256xf32>
    %cst_72 = arith.constant dense<0.000000e+00> : vector<32x64xf32>
    %206 = tpu.matmul %205, %128, %cst_72 {dimension_numbers = #tpu.dot_dimension_numbers<[1], [0], [0], [1], [0, 0, 1, 1], [], []>} : vector<32x256xf32>, vector<256x64xf32>, vector<32x64xf32> -> vector<32x64xf32>
    %207 = vector.broadcast %137 : vector<1x64xf32> to vector<32x64xf32>
    %208 = arith.addf %206, %207 : vector<32x64xf32>
    %209 = arith.addf %208, %194 : vector<32x64xf32>
    %cst_73 = arith.constant dense<0.000000e+00> : vector<32xf32>
    %210 = vector.multi_reduction <add>, %209, %cst_73 [1] : vector<32x64xf32> to vector<32xf32>
    %211 = vector.shape_cast %210 : vector<32xf32> to vector<32x1xf32>
    %cst_74 = arith.constant 6.400000e+01 : f32
    %212 = vector.broadcast %cst_74 : f32 to vector<32x1xf32>
    %213 = arith.divf %211, %212 : vector<32x1xf32>
    %214 = vector.broadcast %213 : vector<32x1xf32> to vector<32x64xf32>
    %215 = arith.subf %209, %214 : vector<32x64xf32>
    %216 = arith.mulf %215, %215 : vector<32x64xf32>
    %cst_75 = arith.constant dense<0.000000e+00> : vector<32xf32>
    %217 = vector.multi_reduction <add>, %216, %cst_75 [1] : vector<32x64xf32> to vector<32xf32>
    %218 = vector.shape_cast %217 : vector<32xf32> to vector<32x1xf32>
    %cst_76 = arith.constant 6.400000e+01 : f32
    %219 = vector.broadcast %cst_76 : f32 to vector<32x1xf32>
    %220 = arith.divf %218, %219 : vector<32x1xf32>
    %221 = vector.broadcast %213 : vector<32x1xf32> to vector<32x64xf32>
    %222 = arith.subf %209, %221 : vector<32x64xf32>
    %cst_77 = arith.constant 9.99999974E-6 : f32
    %223 = vector.broadcast %cst_77 : f32 to vector<32x1xf32>
    %224 = arith.addf %220, %223 : vector<32x1xf32>
    %225 = math.rsqrt %224 : vector<32x1xf32>
    %226 = vector.broadcast %225 : vector<32x1xf32> to vector<32x64xf32>
    %227 = arith.mulf %222, %226 : vector<32x64xf32>
    %228 = vector.broadcast %138 : vector<1x64xf32> to vector<32x64xf32>
    %229 = arith.mulf %227, %228 : vector<32x64xf32>
    %230 = vector.broadcast %139 : vector<1x64xf32> to vector<32x64xf32>
    %231 = arith.addf %229, %230 : vector<32x64xf32>
    %cst_78 = arith.constant 5.000000e-01 : f32
    %232 = vector.broadcast %cst_78 : f32 to vector<32x64xf32>
    %233 = arith.mulf %232, %231 : vector<32x64xf32>
    %cst_79 = arith.constant 0.707106769 : f32
    %234 = vector.broadcast %cst_79 : f32 to vector<32x64xf32>
    %235 = arith.mulf %231, %234 : vector<32x64xf32>
    %236 = math.erf %235 : vector<32x64xf32>
    %cst_80 = arith.constant 1.000000e+00 : f32
    %237 = vector.broadcast %cst_80 : f32 to vector<32x64xf32>
    %238 = arith.addf %237, %236 : vector<32x64xf32>
    %239 = arith.mulf %233, %238 : vector<32x64xf32>
    %c0_81 = arith.constant 0 : index
    %c0_82 = arith.constant 0 : index
    %240 = vector.load %arg6[%c0_81, %c0_82] : memref<1x64xf32, #tpu.memory_space<vmem>>, vector<1x64xf32>
    %cst_83 = arith.constant dense<0.000000e+00> : vector<1x32xf32>
    %241 = tpu.matmul %240, %239, %cst_83 {dimension_numbers = #tpu.dot_dimension_numbers<[1], [1], [0], [0], [0, 0, 1, 0], [], []>} : vector<1x64xf32>, vector<32x64xf32>, vector<1x32xf32> -> vector<1x32xf32>
    %c0_84 = arith.constant 0 : index
    %c0_85 = arith.constant 0 : index
    %242 = memref.load %arg7[%c0_84, %c0_85] : memref<1x1xf32, #tpu.memory_space<smem>>
    %243 = vector.broadcast %242 : f32 to vector<1x32xf32>
    %244 = arith.addf %241, %243 : vector<1x32xf32>
    %c0_86 = arith.constant 0 : index
    %c0_87 = arith.constant 0 : index
    %245 = vector.load %arg8[%c0_86, %c0_87] : memref<1x32xf32, #tpu.memory_space<vmem>>, vector<1x32xf32>
    tpu.vector_store %arg8[%c0_86, %c0_87], %244 {strides = array<i32>} : memref<1x32xf32, #tpu.memory_space<vmem>>, vector<1x32xf32>,
    return
  }
}

</mosaic_0001>

<bundles_post_ra>
// kernel: transformer_forward.1
= control target key start
LH: loop header
LB: loop body
LE: loop exit
PB: predicated region body
PF: predicated region fallthrough
CT: control target
= control target key end

     0   :  { %vm165_vm0 = vcmask 523264   ;;  %v34_v40 = vlaneseq  ;;  %vm473_vm1 = vcmask 130048   ;;  %vm4052_vm11 = vmmov 0   ;;  %s5093_s1 = inlined_call_operand.vmem [shape: f32[2,3,64,64], index: 1, kind: input, shape index: {}]   ;;  %s5094_s0 = inlined_call_operand.vmem [shape: f32[32,64], index: 0, kind: input, shape index: {}]   ;;  %s5095_s5 = inlined_call_operand.vmem [shape: f32[2,10,256], index: 5, kind: input, shape index: {}]   ;;  %s5096_s2 = inlined_call_operand.vmem [shape: f32[2,64,64], index: 2, kind: input, shape index: {}]   ;;  %s5097_s3 = inlined_call_operand.vmem [shape: f32[2,64,256], index: 3, kind: input, shape index: {}]   ;;  %s5098_s4 = inlined_call_operand.vmem [shape: f32[2,256,64], index: 4, kind: input, shape index: {}]   ;;  %s5099_s6 = inlined_call_operand.vmem [shape: f32[1,64], index: 6, kind: input, shape index: {}]   ;;  %s5100_s7 = inlined_call_operand.<no memory space> [shape: f32[1,1], index: 7, kind: input, shape index: {}]   ;;  %s5101_s8 = inlined_call_operand.vmem [shape: f32[1,32], index: 8, kind: output, shape index: {}]  }
   0x1   :  { %v86_v0 = vld [vmem:[%s5093_s1 + $0x40] sm:$0xff]  ;;  %v87_v1 = vld [vmem:[%s5093_s1 + $0x48] sm:$0xff]  ;;  %v88_v2 = vld [vmem:[%s5093_s1 + $0x50] sm:$0xff]  ;;  %vm2884_vm12 = vcmask 253952  }
   0x2   :  { %v3678_v3 = vpack.c.bf16 %v87_v1, %v86_v0  ;;  %v89_v4 = vld [vmem:[%s5093_s1 + $0x58] sm:$0xff]  ;;  %v90_v6 = vld [vmem:[%s5093_s1 + $0x60] sm:$0xff]  ;;  %v91_v7 = vld [vmem:[%s5093_s1 + $0x68] sm:$0xff]  ;;  %v4215_v41 = vshrl.u32 %v34_v40, 7 }
   0x3   :  { %v3682_v5 = vpack.c.bf16 %v89_v4, %v88_v2  ;;  %v4119_v8 = vld [vmem:[%s5094_s0] sm:$0xff]  ;;  %v79_v10 = vld [vmem:[%s5093_s1 + $0x8] sm:$0xff]  ;;  %v80_v12 = vld [vmem:[%s5093_s1 + $0x10] sm:$0xff]  ;;  %v3686_v14 = vpack.c.bf16 %v91_v7, %v90_v6 }
   0x4   :  { %3679 = vmatprep.subr.bf16.mxu1 %v3678_v3  ;;  %3373 = vmatprep.mubr.msk.f32.mxu1 %vm165_vm0, %v4119_v8  ;;  %v78_v9 = vld [vmem:[%s5093_s1] sm:$0xff]  ;;  %v81_v13 = vld [vmem:[%s5093_s1 + $0x18] sm:$0xff]  ;;  %v83_v17 = vld [vmem:[%s5093_s1 + $0x28] sm:$0xff]  ;;  %v4218_v42 = vsub.s32 1, %v4215_v41  ;;  %v4226_v44 = vsub.s32 0, %v4215_v41  ;;  %v354_v59 = vsub.s32 2, %v4215_v41 }
   0x5   :  { %3681 = vmatpush3.bf16.msra.mxu1 %v3678_v3  ;;  %v3662_v11 = vpack.c.bf16 %v79_v10, %v78_v9  ;;  %3351 = vmatprep.mubr.msk.f32.mxu0 %vm165_vm0, %v4119_v8  ;;  %v3666_v15 = vpack.c.bf16 %v81_v13, %v80_v12  ;;  %v82_v16 = vld [vmem:[%s5093_s1 + $0x20] sm:$0xff]  ;;  %v92_v18 = vld [vmem:[%s5093_s1 + $0x70] sm:$0xff]  ;;  %v93_v19 = vld [vmem:[%s5093_s1 + $0x78] sm:$0xff] }
   0x6   :  { %3683 = vmatprep.subr.bf16.mxu1 %v3682_v5  ;;  %v3670_v20 = vpack.c.bf16 %v83_v17, %v82_v16  ;;  %v3690_v21 = vpack.c.bf16 %v93_v19, %v92_v18  ;;  %v84_v22 = vld [vmem:[%s5093_s1 + $0x30] sm:$0xff]  ;;  %v85_v23 = vld [vmem:[%s5093_s1 + $0x38] sm:$0xff]  ;;  %v94_v25 = vld [vmem:[%s5093_s1 + $0x80] sm:$0xff] }
   0x7   :  { %3663 = vmatprep.subr.bf16.mxu0 %v3662_v11  ;;  %v3674_v24 = vpack.c.bf16 %v85_v23, %v84_v22  ;;  %v95_v26 = vld [vmem:[%s5093_s1 + $0x88] sm:$0xff]  ;;  %v96_v29 = vld [vmem:[%s5093_s1 + $0x90] sm:$0xff]  ;;  %v97_v30 = vld [vmem:[%s5093_s1 + $0x98] sm:$0xff] }
   0x8   :  { %3665 = vmatpush3.bf16.msra.mxu0 %v3662_v11  ;;  %v4164_v27 = vld [vmem:[%s5094_s0 + $0x8] sm:$0xff]  ;;  %v3694_v28 = vpack.c.bf16 %v95_v26, %v94_v25  ;;  %v4177_v31 = vld [vmem:[%s5094_s0 + $0x10] sm:$0xff]  ;;  %v3698_v32 = vpack.c.bf16 %v97_v30, %v96_v29  ;;  %v98_v33 = vld [vmem:[%s5093_s1 + $0xa0] sm:$0xff] }
   0x9   :  { %3685 = vmatpush3.bf16.msra.mxu1 %v3682_v5  ;;  %3667 = vmatprep.subr.bf16.mxu0 %v3666_v15  ;;  %v99_v34 = vld [vmem:[%s5093_s1 + $0xa8] sm:$0xff]  ;;  %v4194_v35 = vld [vmem:[%s5094_s0 + $0x18] sm:$0xff]  ;;  %v100_v37 = vld [vmem:[%s5093_s1 + $0xb0] sm:$0xff] }
   0xa   :  { %3687 = vmatprep.subr.bf16.mxu1 %v3686_v14  ;;  %v3702_v36 = vpack.c.bf16 %v99_v34, %v98_v33  ;;  %v101_v38 = vld [vmem:[%s5093_s1 + $0xb8] sm:$0xff]  ;;  %v4223_v43 = vld [vmem:[%s5095_s5] sm:$0xff]  ;;  %v104_v22 = vld [vmem:[%s5096_s2 + $0x10] sm:$0xff]  ;;  %v36_v34 = vadd.s32 8, %v4215_v41 }
   0xb   :  { %v3706_v39 = vpack.c.bf16 %v101_v38, %v100_v37  ;;  %v266_v45 = vrot.slane %v4223_v43, %v4218_v42  ;;  %v164_v47 = vrot.slane %v4223_v43, %v4226_v44  ;;  %v355_v60 = vrot.slane %v4223_v43, %v354_v59  ;;  %v106_v26 = vld [vmem:[%s5096_s2 + $0x20] sm:$0xff]  ;;  %v108_v30 = vld [vmem:[%s5096_s2 + $0x30] sm:$0xff]  ;;  %vm5074_vm10 = vmpackc.low %vm165_vm0, %vm165_vm0 }
   0xc   :  { %3669 = vmatpush3.bf16.msra.mxu0 %v3666_v15  ;;  %v44_v37 = vshra.s32 %v36_v34, 4 }
   0xd   :  { %3689 = vmatpush3.bf16.msra.mxu1 %v3686_v14  ;;  %3671 = vmatprep.subr.bf16.mxu0 %v3670_v20 }
   0xe   :  { %3691 = vmatprep.subr.bf16.mxu1 %v3690_v21 }
  0x10   :  { %3673 = vmatpush3.bf16.msra.mxu0 %v3670_v20  ;;  %v102_v20 = vld [vmem:[%s5096_s2] sm:$0xff] }
  0x11   :  { %3693 = vmatpush3.bf16.msra.mxu1 %v3690_v21  ;;  %3675 = vmatprep.subr.bf16.mxu0 %v3674_v24  ;;  %v103_v21 = vld [vmem:[%s5096_s2 + $0x8] sm:$0xff] }
  0x12   :  { %v3750_v23 = vpack.c.bf16 %v103_v21, %v102_v20 }
  0x14   :  { %3374 = vmatmul.mubr.msk.f32.vlgmr.msra.gmra.mrb[0].mxu1 %vm165_vm0, %v4164_v27  ;;  %3677 = vmatpush3.bf16.msra.mxu0 %v3674_v24  ;;  %v105_v24 = vld [vmem:[%s5096_s2 + $0x18] sm:$0xff] }
  0x15   :  { %3695 = vmatprep.subr.bf16.mxu0 %v3694_v28  ;;  %3376 = vmatprep.mubr.msk.f32.mxu1 %vm165_vm0, %v4177_v31  ;;  %v3754_v25 = vpack.c.bf16 %v105_v24, %v104_v22 }
  0x17   :  { %3352 = vmatmul.mubr.msk.f32.vlgmr.msra.gmra.mrb[0].mxu0 %vm165_vm0, %v4164_v27 }
  0x18   :  { %3697 = vmatpush3.bf16.msra.mxu0 %v3694_v28  ;;  %3354 = vmatprep.mubr.msk.f32.mxu0 %vm165_vm0, %v4177_v31  ;;  %v107_v28 = vld [vmem:[%s5096_s2 + $0x28] sm:$0xff] }
  0x19   :  { %3699 = vmatprep.subr.bf16.mxu0 %v3698_v32  ;;  %3377 = vmatmul.mubr.msk.f32.gmra.mrb[2].mxu1 %vm165_vm0, %v4194_v35  ;;  %v3758_v29 = vpack.c.bf16 %v107_v28, %v106_v26 }
  0x1b   :  { %3355 = vmatmul.mubr.msk.f32.gmra.mrb[2].mxu0 %vm165_vm0, %v4194_v35 }
  0x1c   :  { %3701 = vmatpush3.bf16.msra.mxu0 %v3698_v32  ;;  %3395 = vmatprep.mubr.msk.f32.mxu0 %vm165_vm0, %v4119_v8  ;;  %v109_v32 = vld [vmem:[%s5096_s2 + $0x38] sm:$0xff] }
  0x1d   :  { %3703 = vmatprep.subr.bf16.mxu0 %v3702_v36  ;;  %v3762_v33 = vpack.c.bf16 %v109_v32, %v108_v30 }
  0x20   :  { %3705 = vmatpush3.bf16.msra.mxu0 %v3702_v36  ;;  %v52_v36 = vand.u32 127, %v34_v40 }
  0x21   :  { %3707 = vmatprep.subr.bf16.mxu0 %v3706_v39 }
  0x22   :  { %v53_v38 = vshra.s32 %v52_v36, 4 }
  0x24   :  { %3709 = vmatpush3.bf16.msra.mxu0 %v3706_v39  ;;  %v43_v39 = vshra.s32 %v4215_v41, 4  ;;  %vm55_vm2 = vcmp.eq.s32.totalorder %v44_v37, %v53_v38 }
  0x26   :  { %vm54_vm3 = vcmp.eq.s32.totalorder %v43_v39, %v53_v38 }
  0x27   :  { %3396 = vmatmul.mubr.msk.f32.vlgmr.msra.gmra.mrb[4].mxu0 %vm165_vm0, %v4164_v27 }
  0x28   :  { %3398 = vmatprep.mubr.msk.f32.mxu0 %vm165_vm0, %v4177_v31 }
  0x2b   :  { %3399 = vmatmul.mubr.msk.f32.gmra.mrb[6].mxu0 %vm165_vm0, %v4194_v35 }
  0xe7   :  { %v3375_v46 = vpop.f32.mrb[0].mxu1 }
  0xe8   :  { %v333_v48 = vpop.f32.mrb[1].mxu1  ;;  %v339_v54 = vadd.f32 %v3375_v46, %v266_v45  ;;  %v37_v46 = vadd.s32 16, %v4215_v41 }
  0xe9   :  { %v334_v49 = vadd.f32 %v333_v48, %v266_v45 }
  0xea   :  { %v3353_v50 = vpop.f32.mrb[0].mxu0  ;;  %v45_v40 = vshra.s32 %v37_v46, 4 }
  0xeb   :  { %441 = vxpose.xlu0.b32.start [1/2] (short) (narrow) %v334_v49, 64  ;;  %v4232_v51 = vadd.f32 %v3353_v50, %v164_v47  ;;  %v244_v52 = vpop.f32.mrb[1].mxu0 }
  0xec   :  { %v245_v53 = vadd.f32 %v244_v52, %v164_v47  ;;  %v3378_v2 = vpop.f32.mrb[2].mxu1  ;;  %vm56_vm5 = vcmp.eq.s32.totalorder %v45_v40, %v53_v38 }
  0xed   :  { %v343_v3 = vpop.f32.mrb[3].mxu1  ;;  %v349_v5 = vadd.f32 %v3378_v2, %v266_v45 }
  0xee   :  { %3433 = vmatprep.mubr.msk.f32.mxu0 %vm165_vm0, %v245_v53  ;;  %v3356_v55 = vpop.f32.mrb[2].mxu0  ;;  %v344_v4 = vadd.f32 %v343_v3, %v266_v45  ;;  %v38_v45 = vadd.s32 24, %v4215_v41 }
  0xef   :  { %442 = vxpose.xlu0.b32.end [2/2] (short) (narrow) %v339_v54, 64  ;;  %v4235_v56 = vadd.f32 %v3356_v55, %v164_v47  ;;  %v254_v57 = vpop.f32.mrb[3].mxu0 }
  0xf0   :  { %v4237_v58 = vadd.f32 %v254_v57, %v164_v47  ;;  %692 = vxpose.xlu1.b32.start [1/2] (short) (narrow) %v344_v4, 64  ;;  %v4050_v47 = vmov 0.0   ;;  %v46_v50 = vshra.s32 %v38_v45, 4  ;;  %v40_v57 = vadd.s32 40, %v4215_v41 }
  0xf1   :  { %v4283_v48 = vsel %vm55_vm2, 1.0, %v4050_v47  ;;  %v4286_v49 = vsel %vm54_vm3, 1.0, %v4050_v47 }
  0xf2   :  { %vm57_vm4 = vcmp.eq.s32.totalorder %v46_v50, %v53_v38 }
  0xf4   :  { %693 = vxpose.xlu1.b32.end [2/2] (short) (narrow) %v349_v5, 64 }
  0xfa   :  { %v3397_v61 = vpop.f32.mrb[4].mxu0 }
  0xfb   :  { %v428_v62 = vadd.f32 %v3397_v61, %v355_v60  ;;  %v422_v63 = vpop.f32.mrb[5].mxu0  ;;  %v39_v61 = vadd.s32 32, %v4215_v41 }
  0xfc   :  { %v423_v0 = vadd.f32 %v422_v63, %v355_v60  ;;  %v4293_v63 = vsel %vm57_vm4, 1.0, %v4050_v47 }
  0xfd   :  { %v47_v3 = vshra.s32 %v39_v61, 4 }
  0xfe   :  { %v3710_v1 = vpack.c.bf16 %v428_v62, %v423_v0  ;;  %v3400_v15 = vpop.f32.mrb[6].mxu0  ;;  %v4296_v0 = vsel %vm56_vm5, 1.0, %v4050_v47 }
  0xff   :  { %v438_v16 = vadd.f32 %v3400_v15, %v355_v60  ;;  %v432_v17 = vpop.f32.mrb[7].mxu0  ;;  %vm58_vm7 = vcmp.eq.s32.totalorder %v47_v3, %v53_v38 }
 0x100   :  { %3711 = vmatprep.subr.bf16.mxu1 %v3710_v1  ;;  %v433_v18 = vadd.f32 %v432_v17, %v355_v60 }
 0x101   :  { %3713 = vmatpush3.bf16.msra.mxu1 %v3710_v1  ;;  %v48_v1 = vshra.s32 %v40_v57, 4 }
 0x102   :  { %v4251_v19 = vpack.c.bf16 %v438_v16, %v433_v18  ;;  %3751 = vmatprep.subr.bf16.mxu1 %v3750_v23 }
 0x103   :  { %vm59_vm6 = vcmp.eq.s32.totalorder %v48_v1, %v53_v38 }
 0x16b   :  { %v457_v6 = vpop.trf.xlu0 }
 0x16c   :  { %3405 = vmatprep.mubr.msk.f32.mxu1 %vm473_vm1, %v457_v6 }
 0x16f   :  { %v458_v7 = vpop.trf.xlu0 }
 0x170   :  { %3406 = vmatmul.mubr.msk.f32.vlgmr.msra.gmra.mrb[4].mxu1 %vm473_vm1, %v458_v7  ;;  %v708_v62 = vpop.trf.xlu1  ;;  %v42_v7 = vadd.s32 56, %v4215_v41 }
 0x171   :  { %3753 = vmatpush3.bf16.msra.mxu1 %v3750_v23 }
 0x172   :  { %3755 = vmatprep.subr.bf16.mxu1 %v3754_v25 }
 0x173   :  { %v459_v9 = vpop.trf.xlu0 }
 0x174   :  { %3408 = vmatprep.mubr.msk.f32.mxu1 %vm473_vm1, %v459_v9  ;;  %v709_v9 = vpop.trf.xlu1 }
 0x175   :  { %3757 = vmatpush3.bf16.msra.mxu1 %v3754_v25 }
 0x176   :  { %3759 = vmatprep.subr.bf16.mxu1 %v3758_v29 }
 0x177   :  { %v460_v10 = vpop.trf.xlu0 }
 0x178   :  { %3409 = vmatmul.mubr.msk.f32.gmra.mrb[6].mxu1 %vm473_vm1, %v460_v10  ;;  %v710_v20 = vpop.trf.xlu1 }
 0x179   :  { %3761 = vmatpush3.bf16.msra.mxu1 %v3758_v29 }
 0x17a   :  { %3763 = vmatprep.subr.bf16.mxu1 %v3762_v33 }
 0x17b   :  { %v461_v11 = vpop.trf.xlu0 }
 0x17c   :  { %3411 = vmatprep.mubr.msk.f32.mxu1 %vm473_vm1, %v461_v11  ;;  %v41_v11 = vadd.s32 48, %v4215_v41  ;;  %v711_v25 = vpop.trf.xlu1 }
 0x17d   :  { %3765 = vmatpush3.bf16.msra.mxu1 %v3762_v33 }
 0x17e   :  { %v49_v16 = vshra.s32 %v41_v11, 4 }
 0x17f   :  { %v462_v12 = vpop.trf.xlu0 }
 0x180   :  { %3412 = vmatmul.mubr.msk.f32.gmra.mrb[8].mxu1 %vm473_vm1, %v462_v12  ;;  %v4303_v12 = vsel %vm59_vm6, 1.0, %v4050_v47  ;;  %vm60_vm9 = vcmp.eq.s32.totalorder %v49_v16, %v53_v38  ;;  %v712_v33 = vpop.trf.xlu1 }
 0x181   :  { %v4314_v24 = vsel %vm60_vm9, 1.0, %v4050_v47 }
 0x183   :  { %v463_v13 = vpop.trf.xlu0 }
 0x184   :  { %3414 = vmatprep.mubr.msk.f32.mxu1 %vm473_vm1, %v463_v13  ;;  %v4306_v13 = vsel %vm58_vm7, 1.0, %v4050_v47  ;;  %v713_v34 = vpop.trf.xlu1 }
 0x187   :  { %v464_v14 = vpop.trf.xlu0 }
 0x188   :  { %3415 = vmatmul.mubr.msk.f32.gmra.mrb[10].mxu1 %vm473_vm1, %v464_v14  ;;  %v50_v14 = vshra.s32 %v42_v7, 4  ;;  %v714_v36 = vpop.trf.xlu1 }
 0x18a   :  { %vm61_vm8 = vcmp.eq.s32.totalorder %v50_v14, %v53_v38 }
 0x18b   :  { %v4311_v23 = vsel %vm61_vm8, 1.0, %v4050_v47 }
 0x18c   :  { %v715_v37 = vpop.trf.xlu1 }
 0x243   :  { %v3407_v52 = vpop.f32.mrb[4].mxu1 }
 0x244   :  { %v604_v53 = vmul.f32 %v3407_v52, %v4283_v48  ;;  %v564_v54 = vpop.f32.mrb[5].mxu1 }
 0x245   :  { %v603_v55 = vmul.f32 %v4286_v49, %v564_v54 }
 0x247   :  { %v3714_v60 = vpack.c.bf16 %v604_v53, %v603_v55 }
 0x249   :  { %3715 = vmatprep.subr.bf16.mxu0 %v3714_v60 }
 0x24a   :  { %3717 = vmatpush3.bf16.msra.mxu0 %v3714_v60 }
 0x24b   :  { %v3410_v2 = vpop.f32.mrb[6].mxu1 }
 0x24c   :  { %v606_v4 = vmul.f32 %v3410_v2, %v4293_v63  ;;  %v574_v5 = vpop.f32.mrb[7].mxu1 }
 0x24d   :  { %v605_v6 = vmul.f32 %v4296_v0, %v574_v5 }
 0x24f   :  { %v3718_v10 = vpack.c.bf16 %v606_v4, %v605_v6  ;;  %v944_v6 = vsub.s32 3, %v4215_v41 }
 0x251   :  { %3719 = vmatprep.subr.bf16.mxu0 %v3718_v10  ;;  %v945_v7 = vrot.slane %v4223_v43, %v944_v6 }
 0x252   :  { %3721 = vmatpush3.bf16.msra.mxu0 %v3718_v10 }
 0x253   :  { %v3413_v15 = vpop.f32.mrb[8].mxu1 }
 0x254   :  { %v608_v17 = vmul.f32 %v3413_v15, %v4303_v12  ;;  %v584_v18 = vpop.f32.mrb[9].mxu1 }
 0x255   :  { %v607_v21 = vmul.f32 %v4306_v13, %v584_v18 }
 0x257   :  { %v3722_v22 = vpack.c.bf16 %v608_v17, %v607_v21 }
 0x259   :  { %3723 = vmatprep.subr.bf16.mxu0 %v3722_v22 }
 0x25a   :  { %3725 = vmatpush3.bf16.msra.mxu0 %v3722_v22 }
 0x25b   :  { %v3416_v26 = vpop.f32.mrb[10].mxu1 }
 0x25c   :  { %v610_v28 = vmul.f32 %v3416_v26, %v4311_v23  ;;  %v594_v29 = vpop.f32.mrb[11].mxu1  ;;  %v111_v26 = vld [vmem:[%s5097_s3 + $0x8] sm:$0xff] }
 0x25d   :  { %v609_v30 = vmul.f32 %v4314_v24, %v594_v29 }
 0x25f   :  { %v3726_v32 = vpack.c.bf16 %v610_v28, %v609_v30  ;;  %v113_v28 = vld [vmem:[%s5097_s3 + $0x18] sm:$0xff]  ;;  %v110_v30 = vld [vmem:[%s5097_s3] sm:$0xff] }
 0x260   :  { %v3766_v29 = vpack.c.bf16 %v113_v28, %v111_v26  ;;  %v146_v26 = vld [vmem:[%s5098_s4 + $0xa0] sm:$0xff]  ;;  %v147_v28 = vld [vmem:[%s5098_s4 + $0xa8] sm:$0xff] }
 0x261   :  { %3727 = vmatprep.subr.bf16.mxu0 %v3726_v32 }
 0x262   :  { %3729 = vmatpush3.bf16.msra.mxu0 %v3726_v32  ;;  %v112_v32 = vld [vmem:[%s5097_s3 + $0x10] sm:$0xff] }
 0x263   :  { %3731 = vmatprep.subr.bf16.mxu0 %v4251_v19 }
 0x265   :  { %3434 = vmatmul.mubr.msk.f32.vlgmr.msra.gmra.mrb[8].mxu0 %vm165_vm0, %v4232_v51 }
 0x266   :  { %3733 = vmatpush3.bf16.msra.mxu0 %v4251_v19  ;;  %3440 = vmatprep.mubr.msk.f32.mxu0 %vm473_vm1, %v708_v62 }
 0x269   :  { %3441 = vmatmul.mubr.msk.f32.vlgmr.msra.gmra.mrb[10].mxu0 %vm473_vm1, %v709_v9 }
 0x26a   :  { %3443 = vmatprep.mubr.msk.f32.mxu0 %vm473_vm1, %v710_v20 }
 0x26d   :  { %3444 = vmatmul.mubr.msk.f32.gmra.mrb[12].mxu0 %vm473_vm1, %v711_v25 }
 0x26e   :  { %3446 = vmatprep.mubr.msk.f32.mxu0 %vm473_vm1, %v712_v33  ;;  %v3768_v33 = vpack.c.bf16 %v112_v32, %v110_v30  ;;  %v3790_v30 = vpack.c.bf16 %v147_v28, %v146_v26  ;;  %v130_v32 = vld [vmem:[%s5098_s4 + $0x20] sm:$0xff]  ;;  %v136_v26 = vld [vmem:[%s5098_s4 + $0x50] sm:$0xff]  ;;  %v137_v28 = vld [vmem:[%s5098_s4 + $0x58] sm:$0xff] }
 0x271   :  { %3447 = vmatmul.mubr.msk.f32.gmra.mrb[14].mxu0 %vm473_vm1, %v713_v34  ;;  %v115_v34 = vld [vmem:[%s5097_s3 + $0x28] sm:$0xff] }
 0x272   :  { %3449 = vmatprep.mubr.msk.f32.mxu0 %vm473_vm1, %v714_v36  ;;  %v117_v36 = vld [vmem:[%s5097_s3 + $0x38] sm:$0xff] }
 0x275   :  { %3450 = vmatmul.mubr.msk.f32.gmra.mrb[16].mxu0 %vm473_vm1, %v715_v37  ;;  %v3770_v37 = vpack.c.bf16 %v117_v36, %v115_v34 }
 0x276   :  { %3468 = vmatprep.mubr.msk.f32.mxu0 %vm165_vm0, %v4237_v58 }
 0x338   :  { %v3435_v51 = vpop.f32.mrb[8].mxu0 }
 0x339   :  { %v683_v19 = vpop.f32.mrb[9].mxu0 }
 0x33a   :  { %3487 = vmatprep.mubr.msk.f32.mxu1 %vm165_vm0, %v683_v19  ;;  %v116_v19 = vld [vmem:[%s5097_s3 + $0x30] sm:$0xff] }
 0x33b   :  { %3488 = vmatmul.mubr.msk.f32.vlgmr.msra.gmra.mrb[12].mxu1 %vm165_vm0, %v3435_v51  ;;  %v114_v51 = vld [vmem:[%s5097_s3 + $0x20] sm:$0xff] }
 0x33c   :  { %v3442_v38 = vpop.f32.mrb[10].mxu0 }
 0x33d   :  { %v854_v39 = vmul.f32 %v3442_v38, %v4283_v48  ;;  %v814_v45 = vpop.f32.mrb[11].mxu0  ;;  %v3772_v38 = vpack.c.bf16 %v116_v19, %v114_v51  ;;  %v1102_v19 = vsub.s32 4, %v4215_v41 }
 0x33e   :  { %v853_v46 = vmul.f32 %v4286_v49, %v814_v45  ;;  %v121_v45 = vld [vmem:[%s5097_s3 + $0x58] sm:$0xff] }
 0x340   :  { %v3734_v50 = vpack.c.bf16 %v854_v39, %v853_v46  ;;  %v3445_v52 = vpop.f32.mrb[12].mxu0  ;;  %v119_v39 = vld [vmem:[%s5097_s3 + $0x48] sm:$0xff] }
 0x341   :  { %v856_v40 = vmul.f32 %v3445_v52, %v4293_v63  ;;  %v824_v53 = vpop.f32.mrb[13].mxu0  ;;  %v3774_v46 = vpack.c.bf16 %v121_v45, %v119_v39  ;;  %v120_v52 = vld [vmem:[%s5097_s3 + $0x50] sm:$0xff]  ;;  %v4458_v39 = vrot.slane %v4223_v43, %v1102_v19 }
 0x342   :  { %v855_v54 = vmul.f32 %v4296_v0, %v824_v53  ;;  %3735 = vmatprep.subr.bf16.mxu0 %v3734_v50  ;;  %v123_v53 = vld [vmem:[%s5097_s3 + $0x68] sm:$0xff] }
 0x343   :  { %3737 = vmatpush3.bf16.msra.mxu0 %v3734_v50  ;;  %v118_v50 = vld [vmem:[%s5097_s3 + $0x40] sm:$0xff] }
 0x344   :  { %v3738_v58 = vpack.c.bf16 %v856_v40, %v855_v54  ;;  %v3448_v55 = vpop.f32.mrb[14].mxu0  ;;  %v3776_v40 = vpack.c.bf16 %v120_v52, %v118_v50  ;;  %v125_v54 = vld [vmem:[%s5097_s3 + $0x78] sm:$0xff] }
 0x345   :  { %v858_v57 = vmul.f32 %v3448_v55, %v4303_v12  ;;  %v834_v60 = vpop.f32.mrb[15].mxu0  ;;  %v122_v55 = vld [vmem:[%s5097_s3 + $0x60] sm:$0xff] }
 0x346   :  { %v857_v61 = vmul.f32 %v4306_v13, %v834_v60  ;;  %3739 = vmatprep.subr.bf16.mxu0 %v3738_v58 }
 0x347   :  { %3741 = vmatpush3.bf16.msra.mxu0 %v3738_v58  ;;  %v3778_v58 = vpack.c.bf16 %v125_v54, %v123_v53 }
 0x348   :  { %v3742_v62 = vpack.c.bf16 %v858_v57, %v857_v61  ;;  %v3451_v1 = vpop.f32.mrb[16].mxu0  ;;  %v124_v57 = vld [vmem:[%s5097_s3 + $0x70] sm:$0xff] }
 0x349   :  { %v860_v2 = vmul.f32 %v3451_v1, %v4311_v23  ;;  %v844_v3 = vpop.f32.mrb[17].mxu0  ;;  %v3780_v60 = vpack.c.bf16 %v124_v57, %v122_v55 }
 0x34a   :  { %v859_v4 = vmul.f32 %v4314_v24, %v844_v3  ;;  %3743 = vmatprep.subr.bf16.mxu0 %v3742_v62 }
 0x34b   :  { %3745 = vmatpush3.bf16.msra.mxu0 %v3742_v62 }
 0x34c   :  { %v3746_v5 = vpack.c.bf16 %v860_v2, %v859_v4 }
 0x34e   :  { %3747 = vmatprep.subr.bf16.mxu0 %v3746_v5 }
 0x34f   :  { %3749 = vmatpush3.bf16.msra.mxu0 %v3746_v5 }
 0x350   :  { %3767 = vmatprep.subr.bf16.mxu0 %v3766_v29 }
 0x352   :  { %3469 = vmatmul.mubr.msk.f32.vlgmr.msra.gmra.mrb[18].mxu0 %vm165_vm0, %v4235_v56 }
 0x353   :  { %1200 = vmatprep.mubr.f32.mxu0 %v4050_v47  ;;  %3769 = vmatpush1.bf16.msra.mxu0 %v3768_v33  ;;  %v131_v33 = vld [vmem:[%s5098_s4 + $0x28] sm:$0xff] }
 0x354   :  { %3771 = vmatprep.subr.bf16.mxu0 %v3770_v37  ;;  %v3792_v34 = vpack.c.bf16 %v131_v33, %v130_v32  ;;  %v154_v32 = vld [vmem:[%s5098_s4 + $0xe0] sm:$0xff]  ;;  %v155_v33 = vld [vmem:[%s5098_s4 + $0xe8] sm:$0xff] }
 0x357   :  { %3773 = vmatpush1.bf16.msra.mxu0 %v3772_v38  ;;  %v1110_v38 = vsub.s32 5, %v4215_v41 }
 0x358   :  { %3775 = vmatprep.subr.bf16.mxu0 %v3774_v46 }
 0x359   :  { %v4464_v50 = vrot.slane %v4223_v43, %v1110_v38 }
 0x35b   :  { %3777 = vmatpush1.bf16.msra.mxu0 %v3776_v40 }
 0x35c   :  { %3779 = vmatprep.subr.bf16.mxu0 %v3778_v58 }
 0x35f   :  { %3781 = vmatpush1.bf16.msra.mxu0 %v3780_v60 }
 0x40e   :  { %v3489_v9 = vpop.f32.mrb[12].mxu1 }
 0x40f   :  { %v1030_v10 = vadd.f32 %v3489_v9, %v945_v7  ;;  %v1024_v11 = vpop.f32.mrb[13].mxu1 }
 0x410   :  { %v1025_v14 = vadd.f32 %v1024_v11, %v945_v7 }
 0x411   :  { %v1044_v15 = vadd.f32 %v1030_v10, %v4164_v27 }
 0x412   :  { %v1043_v16 = vadd.f32 %v1025_v14, %v4119_v8 }
 0x413   :  { %v1050_v17 = vsel %vm165_vm0, %v1044_v15, 0.0 }
 0x414   :  { %1051 = vadd.xlane.f32.xlu1 %v1050_v17  ;;  %v1047_v56 = vsel %vm165_vm0, %v1043_v16, 0.0 }
 0x415   :  { %1048 = vadd.xlane.f32.xlu0 %v1047_v56  ;;  %v127_v56 = vld [vmem:[%s5098_s4 + $0x8] sm:$0xff] }
 0x425   :  { %v3470_v18 = vpop.f32.mrb[18].mxu0 }
 0x426   :  { %v933_v20 = vpop.f32.mrb[19].mxu0 }
 0x427   :  { %3490 = vmatprep.mubr.msk.f32.mxu1 %vm165_vm0, %v933_v20  ;;  %v145_v20 = vld [vmem:[%s5098_s4 + $0x98] sm:$0xff] }
 0x428   :  { %3491 = vmatmul.mubr.msk.f32.gmra.mrb[14].mxu1 %vm165_vm0, %v3470_v18  ;;  %v144_v18 = vld [vmem:[%s5098_s4 + $0x90] sm:$0xff] }
 0x4a1   :  { %v1052_v61 = vpop.xlane.xlu1 %1051 }
 0x4a2   :  { %v1049_v21 = vpop.xlane.xlu0 %1048  ;;  %v1061_v2 = vmul.f32 0.015625, %v1052_v61 }
 0x4a3   :  { %v1060_v22 = vmul.f32 0.015625, %v1049_v21 }
 0x4a4   :  { %v4409_v9 = vsub.f32 %v1044_v15, %v1061_v2 }
 0x4a5   :  { %v4355_v25 = vsub.f32 %v1043_v16, %v1060_v22  ;;  %v3786_v22 = vpack.c.bf16 %v145_v20, %v144_v18 }
 0x4a6   :  { %v1069_v16 = vmul.f32 %v4409_v9, %v4409_v9 }
 0x4a7   :  { %v1068_v27 = vmul.f32 %v4355_v25, %v4355_v25 }
 0x4a8   :  { %v1075_v17 = vsel %vm165_vm0, %v1069_v16, 0.0  ;;  %v133_v16 = vld [vmem:[%s5098_s4 + $0x38] sm:$0xff] }
 0x4a9   :  { %v1072_v8 = vsel %vm165_vm0, %v1068_v27, 0.0  ;;  %v128_v27 = vld [vmem:[%s5098_s4 + $0x10] sm:$0xff] }
 0x4aa   :  { %1073 = vadd.xlane.f32.xlu0 %v1072_v8  ;;  %v129_v8 = vld [vmem:[%s5098_s4 + $0x18] sm:$0xff] }
 0x4ab   :  { %v3788_v29 = vpack.c.bf16 %v129_v8, %v128_v27  ;;  %v153_v27 = vld [vmem:[%s5098_s4 + $0xd8] sm:$0xff] }
 0x4fb   :  { %v3492_v62 = vpop.f32.mrb[14].mxu1 }
 0x4fc   :  { %v1034_v1 = vpop.f32.mrb[15].mxu1  ;;  %v1040_v3 = vadd.f32 %v3492_v62, %v945_v7 }
 0x4fd   :  { %v1035_v4 = vadd.f32 %v1034_v1, %v945_v7  ;;  %v143_v7 = vld [vmem:[%s5098_s4 + $0x88] sm:$0xff] }
 0x4fe   :  { %v1046_v11 = vadd.f32 %v1040_v3, %v4194_v35  ;;  %v126_v35 = vld [vmem:[%s5098_s4] sm:$0xff] }
 0x4ff   :  { %v1045_v5 = vadd.f32 %v1035_v4, %v4177_v31  ;;  %v142_v31 = vld [vmem:[%s5098_s4 + $0x80] sm:$0xff]  ;;  %v3784_v21 = vpack.c.bf16 %v127_v56, %v126_v35  ;;  %v135_v56 = vld [vmem:[%s5098_s4 + $0x48] sm:$0xff] }
 0x500   :  { %v1056_v14 = vsel %vm165_vm0, %v1046_v11, 0.0  ;;  %v3782_v15 = vpack.c.bf16 %v143_v7, %v142_v31  ;;  %v150_v31 = vld [vmem:[%s5098_s4 + $0xc0] sm:$0xff]  ;;  %v151_v7 = vld [vmem:[%s5098_s4 + $0xc8] sm:$0xff] }
 0x501   :  { %v1053_v10 = vsel %vm165_vm0, %v1045_v5, 0.0  ;;  %v3798_v35 = vpack.c.bf16 %v151_v7, %v150_v31 }
 0x502   :  { %1054 = vadd.xlane.f32.xlu1 %v1053_v10  ;;  %3783 = vmatprep.subr.bf16.mxu1 %v3782_v15  ;;  %v149_v10 = vld [vmem:[%s5098_s4 + $0xb8] sm:$0xff]  ;;  %v134_v15 = vld [vmem:[%s5098_s4 + $0x40] sm:$0xff] }
 0x503   :  { %3785 = vmatpush3.bf16.msra.mxu1 %v3784_v21  ;;  %v3800_v18 = vpack.c.bf16 %v135_v56, %v134_v15 }
 0x504   :  { %3787 = vmatprep.subr.bf16.mxu1 %v3786_v22  ;;  %v152_v22 = vld [vmem:[%s5098_s4 + $0xd0] sm:$0xff] }
 0x505   :  { %v3802_v8 = vpack.c.bf16 %v153_v27, %v152_v22 }
 0x506   :  { %1057 = vadd.xlane.f32.xlu1 %v1056_v14  ;;  %v132_v14 = vld [vmem:[%s5098_s4 + $0x30] sm:$0xff] }
 0x507   :  { %3789 = vmatpush3.bf16.msra.mxu1 %v3788_v29  ;;  %v3804_v29 = vpack.c.bf16 %v137_v28, %v136_v26 }
 0x508   :  { %3791 = vmatprep.subr.bf16.mxu1 %v3790_v30 }
 0x50a   :  { %1076 = vadd.xlane.f32.xlu1 %v1075_v17  ;;  %v3796_v17 = vpack.c.bf16 %v133_v16, %v132_v14 }
 0x50b   :  { %3793 = vmatpush3.bf16.msra.mxu1 %v3792_v34  ;;  %v3806_v34 = vpack.c.bf16 %v155_v33, %v154_v32 }
 0x537   :  { %v1074_v36 = vpop.xlane.xlu0 %1073 }
 0x538   :  { %v1084_v37 = vmul.f32 0.015625, %v1074_v36  ;;  %v138_v36 = vld [vmem:[%s5098_s4 + $0x60] sm:$0xff] }
 0x53a   :  { %v1088_v51 = vadd.f32 1e-05, %v1084_v37  ;;  %v139_v37 = vld [vmem:[%s5098_s4 + $0x68] sm:$0xff] }
 0x53c   :  { %3977 = vrsqrt.f32 %v1088_v51  ;;  %v3808_v51 = vpack.c.bf16 %v139_v37, %v138_v36 }
 0x546   :  { %v3978_v45 = vpop.eup %3977 }
 0x547   :  { %v1096_v46 = vmul.f32 %v3978_v45, %v4355_v25  ;;  %v156_v45 = vld [vmem:[%s5098_s4 + $0xf0] sm:$0xff] }
 0x549   :  { %v1104_v52 = vmul.f32 %v4458_v39, %v1096_v46  ;;  %v157_v46 = vld [vmem:[%s5098_s4 + $0xf8] sm:$0xff] }
 0x54b   :  { %v4468_v40 = vadd.f32 %v4464_v50, %v1104_v52  ;;  %v3810_v52 = vpack.c.bf16 %v157_v46, %v156_v45 }
 0x54d   :  { %2934 = vmatmul.mubr.msk.f32.vlgmr.msra.gmra.mrb[20].mxu0 %vm165_vm0, %v4468_v40 }
 0x54e   :  { %1206 = vmatprep.mubr.f32.mxu0 %v4050_v47 }
 0x58f   :  { %v1055_v53 = vpop.xlane.xlu1 %1054 }
 0x590   :  { %v1062_v54 = vmul.f32 0.015625, %v1055_v53  ;;  %v140_v53 = vld [vmem:[%s5098_s4 + $0x70] sm:$0xff] }
 0x592   :  { %v4473_v58 = vsub.f32 %v1045_v5, %v1062_v54  ;;  %v148_v5 = vld [vmem:[%s5098_s4 + $0xb0] sm:$0xff]  ;;  %v141_v54 = vld [vmem:[%s5098_s4 + $0x78] sm:$0xff] }
 0x593   :  { %v1058_v25 = vpop.xlane.xlu1 %1057 }
 0x594   :  { %v1063_v55 = vmul.f32 0.015625, %v1058_v25  ;;  %v1070_v57 = vmul.f32 %v4473_v58, %v4473_v58  ;;  %v3812_v25 = vpack.c.bf16 %v141_v54, %v140_v53 }
 0x596   :  { %v4477_v60 = vsub.f32 %v1046_v11, %v1063_v55  ;;  %v1078_v61 = vsel %vm165_vm0, %v1070_v57, 0.0  ;;  %v3794_v11 = vpack.c.bf16 %v149_v10, %v148_v5  ;;  %v4554_v55 = vld [vmem:[%s5095_s5 + $0x10] sm:$0x3]  ;;  %v160_v57 = vld [vmem:[%s5095_s5 + $0x18] sm:$0x3] }
 0x597   :  { %1079 = vadd.xlane.f32.xlu0 %v1078_v61  ;;  %v1077_v62 = vpop.xlane.xlu1 %1076  ;;  %v4561_v61 = vrot.slane %v4554_v55, %v4218_v42 }
 0x598   :  { %v1085_v1 = vmul.f32 0.015625, %v1077_v62  ;;  %v1071_v2 = vmul.f32 %v4477_v60, %v4477_v60  ;;  %3795 = vmatprep.subr.bf16.mxu1 %v3794_v11  ;;  %v4564_v62 = vrot.slane %v160_v57, %v4218_v42 }
 0x599   :  { %3797 = vmatpush3.bf16.msra.mxu1 %v3796_v17 }
 0x59a   :  { %v1089_v3 = vadd.f32 1e-05, %v1085_v1  ;;  %v1081_v4 = vsel %vm165_vm0, %v1071_v2, 0.0  ;;  %3799 = vmatprep.subr.bf16.mxu1 %v3798_v35 }
 0x59b   :  { %1082 = vadd.xlane.f32.xlu1 %v1081_v4 }
 0x59c   :  { %3979 = vrsqrt.f32 %v1089_v3 }
 0x59d   :  { %3801 = vmatpush3.bf16.msra.mxu1 %v3800_v18 }
 0x59e   :  { %3803 = vmatprep.subr.bf16.mxu1 %v3802_v8 }
 0x5a1   :  { %3805 = vmatpush3.bf16.msra.mxu1 %v3804_v29 }
 0x5a2   :  { %3807 = vmatprep.subr.bf16.mxu1 %v3806_v34 }
 0x5a5   :  { %3809 = vmatpush3.bf16.msra.mxu1 %v3808_v51 }
 0x5a6   :  { %v3980_v20 = vpop.eup %3979  ;;  %3811 = vmatprep.subr.bf16.mxu1 %v3810_v52 }
 0x5a7   :  { %v1097_v21 = vmul.f32 %v3980_v20, %v4409_v9 }
 0x5a9   :  { %v1105_v9 = vmul.f32 %v4458_v39, %v1097_v21  ;;  %3813 = vmatpush3.bf16.msra.mxu1 %v3812_v25 }
 0x5ab   :  { %v4522_v30 = vadd.f32 %v4464_v50, %v1105_v9 }
 0x5ad   :  { %2935 = vmatmul.mubr.msk.f32.gmra.mrb[22].mxu0 %vm165_vm0, %v4522_v30 }
 0x5ae   :  { %1212 = vmatprep.mubr.f32.mxu0 %v4050_v47 }
 0x620   :  { %v1202_v1 = vpop.f32.mrb[20].mxu0 }
 0x621   :  { %v1203_v2 = vadd.f32 %v1202_v1, %v4561_v61  ;;  %v1204_v3 = vpop.f32.mrb[21].mxu0  ;;  %v1267_v1 = vsub.s32 6, %v4215_v41 }
 0x622   :  { %v1205_v4 = vadd.f32 %v1204_v3, %v4564_v62 }
 0x623   :  { %v1233_v5 = vmul.f32 0.70710677, %v1203_v2  ;;  %v1225_v21 = vmul.f32 0.5, %v1203_v2  ;;  %v1268_v3 = vrot.slane %v4223_v43, %v1267_v1 }
 0x624   :  { %v1234_v10 = vmul.f32 0.70710677, %v1205_v4  ;;  %v1080_v11 = vpop.xlane.xlu0 %1079  ;;  %v1226_v18 = vmul.f32 0.5, %v1205_v4 }
 0x625   :  { %3981 = verf.f32 %v1233_v5  ;;  %v1086_v14 = vmul.f32 0.015625, %v1080_v11 }
 0x626   :  { %3983 = verf.f32 %v1234_v10 }
 0x627   :  { %v1090_v16 = vadd.f32 1e-05, %v1086_v14 }
 0x628   :  { %v1083_v17 = vpop.xlane.xlu1 %1082 }
 0x629   :  { %3985 = vrsqrt.f32 %v1090_v16  ;;  %v1087_v31 = vmul.f32 0.015625, %v1083_v17 }
 0x62b   :  { %v1091_v7 = vadd.f32 1e-05, %v1087_v31 }
 0x62d   :  { %3987 = vrsqrt.f32 %v1091_v7 }
 0x62f   :  { %v3982_v35 = vpop.eup %3981 }
 0x630   :  { %v3984_v15 = vpop.eup %3983  ;;  %v1249_v56 = vadd.f32 1.0, %v3982_v35 }
 0x631   :  { %v1250_v20 = vadd.f32 1.0, %v3984_v15 }
 0x632   :  { %v1257_v8 = vmul.f32 %v1249_v56, %v1225_v21 }
 0x633   :  { %v3986_v22 = vpop.eup %3985  ;;  %v1258_v27 = vmul.f32 %v1250_v20, %v1226_v18 }
 0x634   :  { %v1098_v26 = vmul.f32 %v3986_v22, %v4473_v58 }
 0x635   :  { %1333 = vmatprep.mubr.f32.mxu1 %v1258_v27 }
 0x636   :  { %1334 = vmatmul.mubr.f32.vlgmr.msra.gmra.mrb[16].mxu1 %v1257_v8  ;;  %v1106_v28 = vmul.f32 %v4458_v39, %v1098_v26 }
 0x637   :  { %v3988_v9 = vpop.eup %3987 }
 0x638   :  { %v4571_v29 = vadd.f32 %v4464_v50, %v1106_v28  ;;  %v1099_v32 = vmul.f32 %v3988_v9, %v4477_v60 }
 0x63a   :  { %2936 = vmatmul.mubr.msk.f32.gmra.mrb[24].mxu0 %vm165_vm0, %v4571_v29  ;;  %v1107_v33 = vmul.f32 %v4458_v39, %v1099_v32 }
 0x63b   :  { %1218 = vmatprep.mubr.f32.mxu0 %v4050_v47 }
 0x63c   :  { %v4579_v34 = vadd.f32 %v4464_v50, %v1107_v33 }
 0x63e   :  { %2937 = vmatmul.mubr.msk.f32.gmra.mrb[26].mxu0 %vm165_vm0, %v4579_v34 }
 0x680   :  { %v1208_v58 = vpop.f32.mrb[22].mxu0 }
 0x681   :  { %v1209_v36 = vadd.f32 %v1208_v58, %v4561_v61  ;;  %v1210_v37 = vpop.f32.mrb[23].mxu0 }
 0x682   :  { %v1211_v51 = vadd.f32 %v1210_v37, %v4564_v62 }
 0x683   :  { %v1235_v60 = vmul.f32 0.70710677, %v1209_v36  ;;  %v1227_v50 = vmul.f32 0.5, %v1209_v36 }
 0x684   :  { %v1236_v45 = vmul.f32 0.70710677, %v1211_v51  ;;  %v1228_v53 = vmul.f32 0.5, %v1211_v51 }
 0x685   :  { %3989 = verf.f32 %v1235_v60 }
 0x686   :  { %3991 = verf.f32 %v1236_v45 }
 0x68f   :  { %v3990_v46 = vpop.eup %3989 }
 0x690   :  { %v3992_v39 = vpop.eup %3991  ;;  %v1251_v52 = vadd.f32 1.0, %v3990_v46 }
 0x691   :  { %v1252_v54 = vadd.f32 1.0, %v3992_v39 }
 0x692   :  { %v1259_v57 = vmul.f32 %v1251_v52, %v1227_v50 }
 0x693   :  { %v1260_v25 = vmul.f32 %v1252_v54, %v1228_v53 }
 0x695   :  { %1338 = vmatprep.mubr.f32.mxu1 %v1260_v25 }
 0x696   :  { %1339 = vmatmul.mubr.f32.gmra.mrb[18].mxu1 %v1259_v57 }
 0x709   :  { %v3186_v2 = vpop.f32.mrb[16].mxu1 }
 0x70a   :  { %v3187_v4 = vpop.f32.mrb[17].mxu1 }
 0x70b   :  { %v3188_v5 = vadd.f32 %v3187_v4, %v3186_v2 }
 0x70d   :  { %v1336_v10 = vadd.f32 %v3188_v5, %v1268_v3  ;;  %v1214_v11 = vpop.f32.mrb[24].mxu0 }
 0x70e   :  { %v1215_v14 = vadd.f32 %v1214_v11, %v4561_v61  ;;  %v1216_v16 = vpop.f32.mrb[25].mxu0 }
 0x70f   :  { %v1217_v17 = vadd.f32 %v1216_v16, %v4564_v62  ;;  %v1354_v31 = vadd.f32 %v1336_v10, %v4468_v40 }
 0x710   :  { %v1237_v7 = vmul.f32 0.70710677, %v1215_v14  ;;  %v1229_v9 = vmul.f32 0.5, %v1215_v14 }
 0x711   :  { %v1238_v35 = vmul.f32 0.70710677, %v1217_v17  ;;  %v1220_v15 = vpop.f32.mrb[26].mxu0  ;;  %v1358_v56 = vsel %vm165_vm0, %v1354_v31, 0.0  ;;  %v1230_v26 = vmul.f32 0.5, %v1217_v17 }
 0x712   :  { %3993 = verf.f32 %v1237_v7  ;;  %v1221_v18 = vadd.f32 %v1220_v15, %v4561_v61  ;;  %1359 = vadd.xlane.f32.xlu0 %v1358_v56  ;;  %v1222_v43 = vpop.f32.mrb[27].mxu0 }
 0x713   :  { %3995 = verf.f32 %v1238_v35  ;;  %v1223_v20 = vadd.f32 %v1222_v43, %v4564_v62 }
 0x714   :  { %v1239_v21 = vmul.f32 0.70710677, %v1221_v18  ;;  %v1231_v60 = vmul.f32 0.5, %v1221_v18 }
 0x715   :  { %v1240_v22 = vmul.f32 0.70710677, %v1223_v20  ;;  %v1232_v37 = vmul.f32 0.5, %v1223_v20 }
 0x716   :  { %3997 = verf.f32 %v1239_v21 }
 0x717   :  { %3999 = verf.f32 %v1240_v22  ;;  %v2938_v22 = vld [vmem:[%s5093_s1 + $0xc0] sm:$0xff] }
 0x71c   :  { %v3994_v27 = vpop.eup %3993 }
 0x71d   :  { %v3996_v8 = vpop.eup %3995  ;;  %v1253_v40 = vadd.f32 1.0, %v3994_v27  ;;  %v2954_v27 = vld [vmem:[%s5093_s1 + $0x140] sm:$0xff] }
 0x71e   :  { %v1254_v28 = vadd.f32 1.0, %v3996_v8 }
 0x71f   :  { %v1261_v61 = vmul.f32 %v1253_v40, %v1229_v9  ;;  %v2955_v40 = vld [vmem:[%s5093_s1 + $0x148] sm:$0xff]  ;;  %v2941_v9 = vld [vmem:[%s5093_s1 + $0xd8] sm:$0xff] }
 0x720   :  { %v3998_v32 = vpop.eup %3997  ;;  %v1262_v33 = vmul.f32 %v1254_v28, %v1230_v26  ;;  %v3846_v26 = vpack.c.bf16 %v2955_v40, %v2954_v27  ;;  %v2940_v28 = vld [vmem:[%s5093_s1 + $0xd0] sm:$0xff] }
 0x721   :  { %v4000_v58 = vpop.eup %3999  ;;  %v1255_v36 = vadd.f32 1.0, %v3998_v32  ;;  %v2956_v32 = vld [vmem:[%s5093_s1 + $0x150] sm:$0xff] }
 0x722   :  { %v1256_v51 = vadd.f32 1.0, %v4000_v58  ;;  %1343 = vmatprep.mubr.f32.mxu1 %v1262_v33  ;;  %3847 = vmatprep.subr.bf16.mxu1 %v3846_v26  ;;  %v3818_v33 = vpack.c.bf16 %v2941_v9, %v2940_v28  ;;  %v2957_v58 = vld [vmem:[%s5093_s1 + $0x158] sm:$0xff] }
 0x723   :  { %1344 = vmatmul.mubr.f32.gmra.mrb[20].mxu1 %v1261_v61  ;;  %v1263_v45 = vmul.f32 %v1255_v36, %v1231_v60  ;;  %v3850_v36 = vpack.c.bf16 %v2957_v58, %v2956_v32  ;;  %v2942_v61 = vld [vmem:[%s5093_s1 + $0xe0] sm:$0xff] }
 0x724   :  { %v1264_v62 = vmul.f32 %v1256_v51, %v1232_v37  ;;  %3849 = vmatpush3.bf16.msra.mxu1 %v3846_v26  ;;  %v2943_v37 = vld [vmem:[%s5093_s1 + $0xe8] sm:$0xff]  ;;  %v2958_v51 = vld [vmem:[%s5093_s1 + $0x160] sm:$0xff] }
 0x725   :  { %3851 = vmatprep.subr.bf16.mxu1 %v3850_v36  ;;  %v3822_v60 = vpack.c.bf16 %v2943_v37, %v2942_v61  ;;  %v2951_v61 = vld [vmem:[%s5093_s1 + $0x128] sm:$0xff] }
 0x726   :  { %1348 = vmatprep.mubr.f32.mxu1 %v1264_v62  ;;  %v2959_v62 = vld [vmem:[%s5093_s1 + $0x168] sm:$0xff] }
 0x727   :  { %1349 = vmatmul.mubr.f32.gmra.mrb[22].mxu1 %v1263_v45  ;;  %v3854_v45 = vpack.c.bf16 %v2959_v62, %v2958_v51  ;;  %v2952_v51 = vld [vmem:[%s5093_s1 + $0x130] sm:$0xff] }
 0x728   :  { %3853 = vmatpush3.bf16.msra.mxu1 %v3850_v36  ;;  %v2950_v36 = vld [vmem:[%s5093_s1 + $0x120] sm:$0xff] }
 0x729   :  { %3855 = vmatprep.subr.bf16.mxu1 %v3854_v45  ;;  %v3838_v37 = vpack.c.bf16 %v2951_v61, %v2950_v36 }
 0x72c   :  { %3857 = vmatpush3.bf16.msra.mxu1 %v3854_v45 }
 0x769   :  { %v3189_v46 = vpop.f32.mrb[18].mxu1 }
 0x76a   :  { %v3190_v39 = vpop.f32.mrb[19].mxu1 }
 0x76b   :  { %v3191_v52 = vadd.f32 %v3190_v39, %v3189_v46  ;;  %v2944_v46 = vld [vmem:[%s5093_s1 + $0xf0] sm:$0xff]  ;;  %v2945_v39 = vld [vmem:[%s5093_s1 + $0xf8] sm:$0xff] }
 0x76d   :  { %v1341_v53 = vadd.f32 %v3191_v52, %v1268_v3  ;;  %v2960_v52 = vld [vmem:[%s5093_s1 + $0x170] sm:$0xff] }
 0x76f   :  { %v1355_v54 = vadd.f32 %v1341_v53, %v4522_v30  ;;  %v3826_v53 = vpack.c.bf16 %v2945_v39, %v2944_v46 }
 0x771   :  { %v1361_v50 = vsel %vm165_vm0, %v1355_v54, 0.0 }
 0x772   :  { %1362 = vadd.xlane.f32.xlu1 %v1361_v50 }
 0x79f   :  { %v1360_v25 = vpop.xlane.xlu0 %1359 }
 0x7a0   :  { %v1370_v57 = vmul.f32 0.015625, %v1360_v25 }
 0x7a2   :  { %v4597_v10 = vsub.f32 %v1354_v31, %v1370_v57 }
 0x7a4   :  { %v1378_v30 = vmul.f32 %v4597_v10, %v4597_v10 }
 0x7a6   :  { %v1382_v31 = vsel %vm165_vm0, %v1378_v30, 0.0 }
 0x7f6   :  { %v3192_v2 = vpop.f32.mrb[20].mxu1 }
 0x7f7   :  { %v3193_v4 = vpop.f32.mrb[21].mxu1 }
 0x7f8   :  { %v3194_v5 = vadd.f32 %v3193_v4, %v3192_v2 }
 0x7fa   :  { %v1346_v11 = vadd.f32 %v3194_v5, %v1268_v3  ;;  %v3195_v14 = vpop.f32.mrb[22].mxu1 }
 0x7fb   :  { %v3196_v16 = vpop.f32.mrb[23].mxu1 }
 0x7fc   :  { %v3197_v17 = vadd.f32 %v3196_v16, %v3195_v14  ;;  %v1356_v7 = vadd.f32 %v1346_v11, %v4571_v29 }
 0x7fe   :  { %v1351_v35 = vadd.f32 %v3197_v17, %v1268_v3  ;;  %v1364_v15 = vsel %vm165_vm0, %v1356_v7, 0.0 }
 0x7ff   :  { %1365 = vadd.xlane.f32.xlu0 %v1364_v15  ;;  %v1363_v56 = vpop.xlane.xlu1 %1362 }
 0x800   :  { %v1371_v18 = vmul.f32 0.015625, %v1363_v56  ;;  %v1357_v43 = vadd.f32 %v1351_v35, %v4579_v34  ;;  %v2939_v34 = vld [vmem:[%s5093_s1 + $0xc8] sm:$0xff] }
 0x801   :  { %v3814_v8 = vpack.c.bf16 %v2939_v34, %v2938_v22  ;;  %v1421_v22 = vrot.slane %v4554_v55, %v4226_v44  ;;  %v2946_v55 = vld [vmem:[%s5093_s1 + $0x100] sm:$0xff] }
 0x802   :  { %v4604_v20 = vsub.f32 %v1355_v54, %v1371_v18  ;;  %v1367_v21 = vsel %vm165_vm0, %v1357_v43, 0.0  ;;  %v2961_v54 = vld [vmem:[%s5093_s1 + $0x178] sm:$0xff] }
 0x803   :  { %1383 = vadd.xlane.f32.xlu0 %v1382_v31  ;;  %1368 = vadd.xlane.f32.xlu1 %v1367_v21  ;;  %v3858_v50 = vpack.c.bf16 %v2961_v54, %v2960_v52  ;;  %v1412_v21 = vsub.s32 7, %v4215_v41 }
 0x804   :  { %v1379_v29 = vmul.f32 %v4604_v20, %v4604_v20  ;;  %3815 = vmatprep.subr.bf16.mxu0 %v3814_v8 }
 0x805   :  { %3817 = vmatpush3.bf16.msra.mxu0 %v3814_v8  ;;  %3859 = vmatprep.subr.bf16.mxu1 %v3858_v50 }
 0x806   :  { %v1385_v3 = vsel %vm165_vm0, %v1379_v29, 0.0  ;;  %3819 = vmatprep.subr.bf16.mxu0 %v3818_v33  ;;  %3861 = vmatpush3.bf16.msra.mxu1 %v3858_v50  ;;  %v4049_v29 = vld [vmem:[%s5095_s5] sm:$0xff] }
 0x807   :  { %1386 = vadd.xlane.f32.xlu1 %v1385_v3 }
 0x809   :  { %3821 = vmatpush3.bf16.msra.mxu0 %v3818_v33  ;;  %v2949_v33 = vld [vmem:[%s5093_s1 + $0x118] sm:$0xff] }
 0x80a   :  { %3823 = vmatprep.subr.bf16.mxu0 %v3822_v60 }
 0x80d   :  { %3825 = vmatpush3.bf16.msra.mxu0 %v3822_v60  ;;  %v2953_v60 = vld [vmem:[%s5093_s1 + $0x138] sm:$0xff] }
 0x80e   :  { %3827 = vmatprep.subr.bf16.mxu0 %v3826_v53  ;;  %v3842_v62 = vpack.c.bf16 %v2953_v60, %v2952_v51 }
 0x811   :  { %3829 = vmatpush3.bf16.msra.mxu0 %v3826_v53 }
 0x88c   :  { %v1366_v25 = vpop.xlane.xlu0 %1365 }
 0x88d   :  { %v1372_v57 = vmul.f32 0.015625, %v1366_v25 }
 0x88f   :  { %v4659_v2 = vsub.f32 %v1356_v7, %v1372_v57 }
 0x890   :  { %v1384_v4 = vpop.xlane.xlu0 %1383  ;;  %v1369_v5 = vpop.xlane.xlu1 %1368 }
 0x891   :  { %v1394_v11 = vmul.f32 0.015625, %v1384_v4  ;;  %v1373_v14 = vmul.f32 0.015625, %v1369_v5  ;;  %v1380_v16 = vmul.f32 %v4659_v2, %v4659_v2 }
 0x893   :  { %v1398_v17 = vadd.f32 1e-05, %v1394_v11  ;;  %v1377_v35 = vsub.f32 %v1357_v43, %v1373_v14  ;;  %v1388_v15 = vsel %vm165_vm0, %v1380_v16, 0.0  ;;  %v1413_v43 = vrot.slane %v4049_v29, %v1412_v21 }
 0x894   :  { %1389 = vadd.xlane.f32.xlu0 %v1388_v15  ;;  %v1387_v30 = vpop.xlane.xlu1 %1386 }
 0x895   :  { %4001 = vrsqrt.f32 %v1398_v17  ;;  %v1395_v56 = vmul.f32 0.015625, %v1387_v30  ;;  %v1381_v18 = vmul.f32 %v1377_v35, %v1377_v35 }
 0x897   :  { %v1399_v31 = vadd.f32 1e-05, %v1395_v56  ;;  %v1391_v7 = vsel %vm165_vm0, %v1381_v18, 0.0 }
 0x898   :  { %1392 = vadd.xlane.f32.xlu1 %v1391_v7 }
 0x899   :  { %4003 = vrsqrt.f32 %v1399_v31 }
 0x89f   :  { %v4002_v3 = vpop.eup %4001 }
 0x8a0   :  { %v1406_v34 = vmul.f32 %v4002_v3, %v4597_v10  ;;  %v2947_v10 = vld [vmem:[%s5093_s1 + $0x108] sm:$0xff] }
 0x8a1   :  { %v3830_v32 = vpack.c.bf16 %v2947_v10, %v2946_v55 }
 0x8a2   :  { %v1414_v27 = vmul.f32 %v1413_v43, %v1406_v34 }
 0x8a3   :  { %v4004_v8 = vpop.eup %4003  ;;  %3831 = vmatprep.subr.bf16.mxu0 %v3830_v32 }
 0x8a4   :  { %v1407_v40 = vmul.f32 %v4004_v8, %v4604_v20  ;;  %v4675_v26 = vadd.f32 %v1421_v22, %v1414_v27  ;;  %v2948_v20 = vld [vmem:[%s5093_s1 + $0x110] sm:$0xff] }
 0x8a5   :  { %v3834_v58 = vpack.c.bf16 %v2949_v33, %v2948_v20 }
 0x8a6   :  { %v1415_v28 = vmul.f32 %v1413_v43, %v1407_v40  ;;  %3509 = vmatprep.mubr.msk.f32.mxu0 %vm165_vm0, %v4675_v26  ;;  %3553 = vmatprep.mubr.msk.f32.mxu1 %vm165_vm0, %v4675_v26 }
 0x8a8   :  { %v4681_v9 = vadd.f32 %v1421_v22, %v1415_v28 }
 0x8aa   :  { %3510 = vmatmul.mubr.msk.f32.vlgmr.msra.gmra.mrb[28].mxu0 %vm165_vm0, %v4681_v9  ;;  %3554 = vmatmul.mubr.msk.f32.vlgmr.msra.gmra.mrb[24].mxu1 %vm165_vm0, %v4681_v9 }
 0x8ab   :  { %3833 = vmatpush3.bf16.msra.mxu0 %v3830_v32 }
 0x8ac   :  { %3835 = vmatprep.subr.bf16.mxu0 %v3834_v58 }
 0x8af   :  { %3837 = vmatpush3.bf16.msra.mxu0 %v3834_v58 }
 0x8b0   :  { %3839 = vmatprep.subr.bf16.mxu0 %v3838_v37 }
 0x8b3   :  { %3841 = vmatpush3.bf16.msra.mxu0 %v3838_v37 }
 0x8b4   :  { %3843 = vmatprep.subr.bf16.mxu0 %v3842_v62 }
 0x8b7   :  { %3845 = vmatpush3.bf16.msra.mxu0 %v3842_v62 }
 0x921   :  { %v1390_v45 = vpop.xlane.xlu0 %1389 }
 0x922   :  { %v1396_v46 = vmul.f32 0.015625, %v1390_v45 }
 0x924   :  { %v1400_v39 = vadd.f32 1e-05, %v1396_v46 }
 0x925   :  { %v1393_v52 = vpop.xlane.xlu1 %1392 }
 0x926   :  { %4005 = vrsqrt.f32 %v1400_v39  ;;  %v1397_v53 = vmul.f32 0.015625, %v1393_v52 }
 0x928   :  { %v1401_v54 = vadd.f32 1e-05, %v1397_v53 }
 0x92a   :  { %4007 = vrsqrt.f32 %v1401_v54 }
 0x930   :  { %v4006_v50 = vpop.eup %4005 }
 0x931   :  { %v1408_v25 = vmul.f32 %v4006_v50, %v4659_v2  ;;  %v4735_v2 = vld [vmem:[%s5095_s5 + $0x20] sm:$0xff] }
 0x932   :  { %v1707_v17 = vrot.slane %v4735_v2, %v354_v59  ;;  %v1618_v40 = vrot.slane %v4735_v2, %v4218_v42 }
 0x933   :  { %v1416_v57 = vmul.f32 %v1413_v43, %v1408_v25 }
 0x934   :  { %v4008_v4 = vpop.eup %4007 }
 0x935   :  { %v4712_v5 = vadd.f32 %v1421_v22, %v1416_v57  ;;  %v1409_v11 = vmul.f32 %v4008_v4, %v1377_v35  ;;  %v4742_v35 = vrot.slane %v4735_v2, %v4226_v44 }
 0x937   :  { %3512 = vmatprep.mubr.msk.f32.mxu0 %vm165_vm0, %v4712_v5  ;;  %3556 = vmatprep.mubr.msk.f32.mxu1 %vm165_vm0, %v4712_v5  ;;  %v1417_v14 = vmul.f32 %v1413_v43, %v1409_v11 }
 0x939   :  { %v4718_v16 = vadd.f32 %v1421_v22, %v1417_v14 }
 0x93b   :  { %3513 = vmatmul.mubr.msk.f32.gmra.mrb[30].mxu0 %vm165_vm0, %v4718_v16  ;;  %3557 = vmatmul.mubr.msk.f32.gmra.mrb[26].mxu1 %vm165_vm0, %v4718_v16 }
 0x93c   :  { %3531 = vmatprep.mubr.msk.f32.mxu0 %vm165_vm0, %v4675_v26 }
 0x93f   :  { %3532 = vmatmul.mubr.msk.f32.vlgmr.msra.gmra.mrb[32].mxu0 %vm165_vm0, %v4681_v9 }
 0x940   :  { %3534 = vmatprep.mubr.msk.f32.mxu0 %vm165_vm0, %v4712_v5 }
 0x943   :  { %3535 = vmatmul.mubr.msk.f32.gmra.mrb[34].mxu0 %vm165_vm0, %v4718_v16 }
 0x97d   :  { %v4744_v15 = vpop.f32.mrb[28].mxu0  ;;  %v3555_v30 = vpop.f32.mrb[24].mxu1 }
 0x97e   :  { %v1780_v56 = vadd.f32 %v3555_v30, %v1707_v17  ;;  %v1596_v18 = vpop.f32.mrb[29].mxu0  ;;  %v1774_v31 = vpop.f32.mrb[25].mxu1 }
 0x97f   :  { %v1597_v7 = vadd.f32 %v1596_v18, %v4742_v35  ;;  %v1775_v29 = vadd.f32 %v1774_v31, %v1707_v17 }
 0x981   :  { %v3862_v43 = vpack.c.bf16 %v1780_v56, %v1775_v29  ;;  %3591 = vmatprep.mubr.msk.f32.mxu1 %vm165_vm0, %v1597_v7 }
 0x983   :  { %3863 = vmatprep.subr.bf16.mxu0 %v3862_v43 }
 0x984   :  { %3865 = vmatpush3.bf16.msra.mxu0 %v3862_v43 }
 0xa0e   :  { %v4748_v3 = vpop.f32.mrb[30].mxu0  ;;  %v3558_v59 = vpop.f32.mrb[26].mxu1 }
 0xa0f   :  { %v1790_v22 = vadd.f32 %v3558_v59, %v1707_v17  ;;  %v1606_v34 = vpop.f32.mrb[31].mxu0  ;;  %v1784_v27 = vpop.f32.mrb[27].mxu1 }
 0xa10   :  { %v1785_v8 = vadd.f32 %v1784_v27, %v1707_v17  ;;  %v1607_v52 = vadd.f32 %v1606_v34, %v4742_v35 }
 0xa12   :  { %v4752_v28 = vpack.c.bf16 %v1790_v22, %v1785_v8  ;;  %v3533_v55 = vpop.f32.mrb[32].mxu0 }
 0xa13   :  { %v1685_v10 = vpop.f32.mrb[33].mxu0  ;;  %v1691_v58 = vadd.f32 %v3533_v55, %v1618_v40 }
 0xa14   :  { %v1686_v20 = vadd.f32 %v1685_v10, %v1618_v40 }
 0xa16   :  { %v3536_v32 = vpop.f32.mrb[34].mxu0  ;;  %1793 = vxpose.xlu0.b32.start [1/2] (short) (narrow) %v1686_v20, 64 }
 0xa17   :  { %v1695_v33 = vpop.f32.mrb[35].mxu0  ;;  %v1701_v61 = vadd.f32 %v3536_v32, %v1618_v40 }
 0xa18   :  { %v1696_v36 = vadd.f32 %v1695_v33, %v1618_v40  ;;  %v2962_v33 = vld [vmem:[%s5096_s2 + $0x40] sm:$0xff] }
 0xa1a   :  { %2043 = vxpose.xlu1.b32.start [1/2] (short) (narrow) %v1696_v36, 64  ;;  %1794 = vxpose.xlu0.b32.end [2/2] (short) (narrow) %v1691_v58, 64  ;;  %v2963_v58 = vld [vmem:[%s5096_s2 + $0x48] sm:$0xff]  ;;  %v1602_v36 = vadd.f32 %v4744_v15, %v4742_v35 }
 0xa1e   :  { %2044 = vxpose.xlu1.b32.end [2/2] (short) (narrow) %v1701_v61, 64  ;;  %v3902_v61 = vpack.c.bf16 %v2963_v58, %v2962_v33 }
 0xa96   :  { %v1809_v37 = vpop.trf.xlu0 }
 0xa97   :  { %3563 = vmatprep.mubr.msk.f32.mxu0 %vm473_vm1, %v1809_v37  ;;  %v2964_v37 = vld [vmem:[%s5096_s2 + $0x50] sm:$0xff] }
 0xa9a   :  { %v1810_v51 = vpop.trf.xlu0  ;;  %v2059_v11 = vpop.trf.xlu1 }
 0xa9b   :  { %3564 = vmatmul.mubr.msk.f32.vlgmr.msra.gmra.mrb[36].mxu0 %vm473_vm1, %v1810_v51  ;;  %v2965_v51 = vld [vmem:[%s5096_s2 + $0x58] sm:$0xff] }
 0xa9c   :  { %v3906_v15 = vpack.c.bf16 %v2965_v51, %v2964_v37 }
 0xa9e   :  { %v1811_v60 = vpop.trf.xlu0  ;;  %v2060_v18 = vpop.trf.xlu1 }
 0xa9f   :  { %3566 = vmatprep.mubr.msk.f32.mxu0 %vm473_vm1, %v1811_v60 }
 0xaa2   :  { %v1812_v62 = vpop.trf.xlu0  ;;  %v2061_v59 = vpop.trf.xlu1 }
 0xaa3   :  { %3567 = vmatmul.mubr.msk.f32.gmra.mrb[38].mxu0 %vm473_vm1, %v1812_v62  ;;  %v2966_v62 = vld [vmem:[%s5096_s2 + $0x60] sm:$0xff] }
 0xaa6   :  { %v1813_v45 = vpop.trf.xlu0  ;;  %v2062_v27 = vpop.trf.xlu1 }
 0xaa7   :  { %3569 = vmatprep.mubr.msk.f32.mxu0 %vm473_vm1, %v1813_v45  ;;  %v2967_v45 = vld [vmem:[%s5096_s2 + $0x68] sm:$0xff] }
 0xaaa   :  { %v1814_v46 = vpop.trf.xlu0  ;;  %v2063_v32 = vpop.trf.xlu1 }
 0xaab   :  { %3570 = vmatmul.mubr.msk.f32.gmra.mrb[40].mxu0 %vm473_vm1, %v1814_v46 }
 0xaae   :  { %v1815_v39 = vpop.trf.xlu0  ;;  %v2064_v60 = vpop.trf.xlu1 }
 0xaaf   :  { %3572 = vmatprep.mubr.msk.f32.mxu0 %vm473_vm1, %v1815_v39  ;;  %v2968_v39 = vld [vmem:[%s5096_s2 + $0x70] sm:$0xff] }
 0xab2   :  { %v1816_v53 = vpop.trf.xlu0  ;;  %v2065_v46 = vpop.trf.xlu1 }
 0xab3   :  { %3573 = vmatmul.mubr.msk.f32.gmra.mrb[42].mxu0 %vm473_vm1, %v1816_v53 }
 0xab4   :  { %3626 = vmatprep.mubr.msk.f32.mxu0 %vm165_vm0, %v1607_v52  ;;  %v2969_v52 = vld [vmem:[%s5096_s2 + $0x78] sm:$0xff] }
 0xab5   :  { %v3914_v53 = vpack.c.bf16 %v2969_v52, %v2968_v39 }
 0xb6e   :  { %v3565_v54 = vpop.f32.mrb[36].mxu0 }
 0xb6f   :  { %v1955_v50 = vmul.f32 %v3565_v54, %v4283_v48  ;;  %v1915_v25 = vpop.f32.mrb[37].mxu0  ;;  %v2066_v54 = vpop.trf.xlu1 }
 0xb70   :  { %v1954_v57 = vmul.f32 %v4286_v49, %v1915_v25 }
 0xb72   :  { %v3866_v4 = vpack.c.bf16 %v1955_v50, %v1954_v57 }
 0xb74   :  { %3867 = vmatprep.subr.bf16.mxu1 %v3866_v4 }
 0xb75   :  { %3869 = vmatpush3.bf16.msra.mxu1 %v3866_v4 }
 0xb76   :  { %v3568_v14 = vpop.f32.mrb[38].mxu0 }
 0xb77   :  { %v1957_v17 = vmul.f32 %v3568_v14, %v4293_v63  ;;  %v1925_v30 = vpop.f32.mrb[39].mxu0 }
 0xb78   :  { %v1956_v56 = vmul.f32 %v4296_v0, %v1925_v30 }
 0xb7a   :  { %v3870_v31 = vpack.c.bf16 %v1957_v17, %v1956_v56 }
 0xb7c   :  { %3871 = vmatprep.subr.bf16.mxu1 %v3870_v31 }
 0xb7d   :  { %3873 = vmatpush3.bf16.msra.mxu1 %v3870_v31 }
 0xb7e   :  { %v3571_v7 = vpop.f32.mrb[40].mxu0 }
 0xb7f   :  { %v1959_v29 = vmul.f32 %v3571_v7, %v4303_v12  ;;  %v1935_v43 = vpop.f32.mrb[41].mxu0 }
 0xb80   :  { %v1958_v22 = vmul.f32 %v4306_v13, %v1935_v43 }
 0xb82   :  { %v3874_v34 = vpack.c.bf16 %v1959_v29, %v1958_v22 }
 0xb84   :  { %3875 = vmatprep.subr.bf16.mxu1 %v3874_v34 }
 0xb85   :  { %3877 = vmatpush3.bf16.msra.mxu1 %v3874_v34 }
 0xb86   :  { %v3574_v8 = vpop.f32.mrb[42].mxu0 }
 0xb87   :  { %v1961_v40 = vmul.f32 %v3574_v8, %v4311_v23  ;;  %v1945_v55 = vpop.f32.mrb[43].mxu0 }
 0xb88   :  { %v1960_v10 = vmul.f32 %v4314_v24, %v1945_v55 }
 0xb8a   :  { %v3878_v20 = vpack.c.bf16 %v1961_v40, %v1960_v10 }
 0xb8c   :  { %3879 = vmatprep.subr.bf16.mxu1 %v3878_v20 }
 0xb8d   :  { %3881 = vmatpush3.bf16.msra.mxu1 %v3878_v20 }
 0xb8e   :  { %3883 = vmatprep.subr.bf16.mxu1 %v4752_v28 }
 0xb90   :  { %3592 = vmatmul.mubr.msk.f32.vlgmr.msra.gmra.mrb[28].mxu1 %vm165_vm0, %v1602_v36 }
 0xb91   :  { %3885 = vmatpush3.bf16.msra.mxu1 %v4752_v28  ;;  %3598 = vmatprep.mubr.msk.f32.mxu1 %vm473_vm1, %v2059_v11  ;;  %v3910_v28 = vpack.c.bf16 %v2967_v45, %v2966_v62 }
 0xb92   :  { %3903 = vmatprep.subr.bf16.mxu1 %v3902_v61 }
 0xb94   :  { %3599 = vmatmul.mubr.msk.f32.vlgmr.msra.gmra.mrb[30].mxu1 %vm473_vm1, %v2060_v18 }
 0xb95   :  { %3601 = vmatprep.mubr.msk.f32.mxu1 %vm473_vm1, %v2061_v59  ;;  %3905 = vmatpush3.bf16.msra.mxu1 %v3902_v61 }
 0xb96   :  { %3907 = vmatprep.subr.bf16.mxu1 %v3906_v15 }
 0xb98   :  { %3602 = vmatmul.mubr.msk.f32.gmra.mrb[32].mxu1 %vm473_vm1, %v2062_v27 }
 0xb99   :  { %3604 = vmatprep.mubr.msk.f32.mxu1 %vm473_vm1, %v2063_v32  ;;  %3909 = vmatpush3.bf16.msra.mxu1 %v3906_v15 }
 0xb9a   :  { %3911 = vmatprep.subr.bf16.mxu1 %v3910_v28 }
 0xb9c   :  { %3605 = vmatmul.mubr.msk.f32.gmra.mrb[34].mxu1 %vm473_vm1, %v2064_v60 }
 0xb9d   :  { %3607 = vmatprep.mubr.msk.f32.mxu1 %vm473_vm1, %v2065_v46  ;;  %3913 = vmatpush3.bf16.msra.mxu1 %v3910_v28 }
 0xb9e   :  { %3915 = vmatprep.subr.bf16.mxu1 %v3914_v53 }
 0xba0   :  { %3608 = vmatmul.mubr.msk.f32.gmra.mrb[36].mxu1 %vm473_vm1, %v2066_v54 }
 0xba1   :  { %3917 = vmatpush3.bf16.msra.mxu1 %v3914_v53 }
 0xc63   :  { %v3593_v50 = vpop.f32.mrb[28].mxu1 }
 0xc64   :  { %v2034_v25 = vpop.f32.mrb[29].mxu1 }
 0xc65   :  { %3645 = vmatprep.mubr.msk.f32.mxu1 %vm165_vm0, %v2034_v25  ;;  %v2972_v25 = vld [vmem:[%s5097_s3 + $0x90] sm:$0xff] }
 0xc66   :  { %3646 = vmatmul.mubr.msk.f32.vlgmr.msra.gmra.mrb[38].mxu1 %vm165_vm0, %v3593_v50  ;;  %v2970_v50 = vld [vmem:[%s5097_s3 + $0x80] sm:$0xff] }
 0xc67   :  { %v3600_v57 = vpop.f32.mrb[30].mxu1 }
 0xc68   :  { %v2205_v4 = vmul.f32 %v3600_v57, %v4283_v48  ;;  %v2165_v11 = vpop.f32.mrb[31].mxu1  ;;  %v3920_v57 = vpack.c.bf16 %v2972_v25, %v2970_v50  ;;  %v2989_v50 = vld [vmem:[%s5098_s4 + $0x118] sm:$0xff]  ;;  %v3006_v25 = vld [vmem:[%s5098_s4 + $0x1a0] sm:$0xff] }
 0xc69   :  { %v2204_v14 = vmul.f32 %v4286_v49, %v2165_v11  ;;  %v2977_v11 = vld [vmem:[%s5097_s3 + $0xb8] sm:$0xff] }
 0xc6b   :  { %v3886_v17 = vpack.c.bf16 %v2205_v4, %v2204_v14  ;;  %v3603_v30 = vpop.f32.mrb[32].mxu1  ;;  %v2975_v4 = vld [vmem:[%s5097_s3 + $0xa8] sm:$0xff] }
 0xc6c   :  { %v2207_v56 = vmul.f32 %v3603_v30, %v4293_v63  ;;  %v2175_v18 = vpop.f32.mrb[33].mxu1  ;;  %v3922_v14 = vpack.c.bf16 %v2977_v11, %v2975_v4  ;;  %v2976_v30 = vld [vmem:[%s5097_s3 + $0xb0] sm:$0xff] }
 0xc6d   :  { %v2206_v31 = vmul.f32 %v4296_v0, %v2175_v18  ;;  %3887 = vmatprep.subr.bf16.mxu0 %v3886_v17  ;;  %v2979_v18 = vld [vmem:[%s5097_s3 + $0xc8] sm:$0xff] }
 0xc6e   :  { %3889 = vmatpush3.bf16.msra.mxu0 %v3886_v17  ;;  %v2974_v17 = vld [vmem:[%s5097_s3 + $0xa0] sm:$0xff] }
 0xc6f   :  { %v3890_v7 = vpack.c.bf16 %v2207_v56, %v2206_v31  ;;  %v3606_v29 = vpop.f32.mrb[34].mxu1  ;;  %v3924_v56 = vpack.c.bf16 %v2976_v30, %v2974_v17  ;;  %v2981_v31 = vld [vmem:[%s5097_s3 + $0xd8] sm:$0xff]  ;;  %v2991_v17 = vld [vmem:[%s5098_s4 + $0x128] sm:$0xff] }
 0xc70   :  { %v2209_v43 = vmul.f32 %v3606_v29, %v4303_v12  ;;  %v2185_v59 = vpop.f32.mrb[35].mxu1  ;;  %v1612_v12 = vadd.f32 %v4748_v3, %v4742_v35  ;;  %v2978_v29 = vld [vmem:[%s5097_s3 + $0xc0] sm:$0xff] }
 0xc71   :  { %v2208_v22 = vmul.f32 %v4306_v13, %v2185_v59  ;;  %3891 = vmatprep.subr.bf16.mxu0 %v3890_v7  ;;  %v2296_v13 = vrot.slane %v4735_v2, %v944_v6 }
 0xc72   :  { %3893 = vmatpush3.bf16.msra.mxu0 %v3890_v7  ;;  %v3926_v7 = vpack.c.bf16 %v2981_v31, %v2979_v18  ;;  %v3009_v18 = vld [vmem:[%s5098_s4 + $0x1b8] sm:$0xff] }
 0xc73   :  { %v3894_v48 = vpack.c.bf16 %v2209_v43, %v2208_v22  ;;  %v3609_v49 = vpop.f32.mrb[36].mxu1  ;;  %v2980_v43 = vld [vmem:[%s5097_s3 + $0xd0] sm:$0xff]  ;;  %v2983_v22 = vld [vmem:[%s5097_s3 + $0xe8] sm:$0xff] }
 0xc74   :  { %v2211_v34 = vmul.f32 %v3609_v49, %v4311_v23  ;;  %v2195_v27 = vpop.f32.mrb[37].mxu1  ;;  %v3928_v59 = vpack.c.bf16 %v2980_v43, %v2978_v29  ;;  %v2993_v29 = vld [vmem:[%s5098_s4 + $0x138] sm:$0xff] }
 0xc75   :  { %v2210_v63 = vmul.f32 %v4314_v24, %v2195_v27  ;;  %3895 = vmatprep.subr.bf16.mxu0 %v3894_v48  ;;  %v2984_v27 = vld [vmem:[%s5097_s3 + $0xf0] sm:$0xff] }
 0xc76   :  { %3897 = vmatpush3.bf16.msra.mxu0 %v3894_v48  ;;  %v2985_v48 = vld [vmem:[%s5097_s3 + $0xf8] sm:$0xff] }
 0xc77   :  { %v3898_v0 = vpack.c.bf16 %v2211_v34, %v2210_v63  ;;  %v3930_v49 = vpack.c.bf16 %v2985_v48, %v2983_v22  ;;  %v2982_v34 = vld [vmem:[%s5097_s3 + $0xe0] sm:$0xff]  ;;  %v3011_v22 = vld [vmem:[%s5098_s4 + $0x1c8] sm:$0xff] }
 0xc78   :  { %v3932_v63 = vpack.c.bf16 %v2984_v27, %v2982_v34  ;;  %v2995_v34 = vld [vmem:[%s5098_s4 + $0x148] sm:$0xff] }
 0xc79   :  { %3899 = vmatprep.subr.bf16.mxu0 %v3898_v0 }
 0xc7a   :  { %3901 = vmatpush3.bf16.msra.mxu0 %v3898_v0 }
 0xc7d   :  { %3627 = vmatmul.mubr.msk.f32.vlgmr.msra.gmra.mrb[44].mxu0 %vm165_vm0, %v1612_v12 }
 0xc7e   :  { %2550 = vmatprep.mubr.f32.mxu0 %v4050_v47 }
 0xd39   :  { %v3647_v23 = vpop.f32.mrb[38].mxu1 }
 0xd3a   :  { %v2381_v8 = vadd.f32 %v3647_v23, %v2296_v13  ;;  %v2375_v40 = vpop.f32.mrb[39].mxu1 }
 0xd3b   :  { %v2376_v24 = vadd.f32 %v2375_v40, %v2296_v13 }
 0xd3c   :  { %v2395_v55 = vadd.f32 %v2381_v8, %v4681_v9 }
 0xd3d   :  { %v2394_v10 = vadd.f32 %v2376_v24, %v4675_v26 }
 0xd3e   :  { %v2401_v20 = vsel %vm165_vm0, %v2395_v55, 0.0 }
 0xd3f   :  { %2402 = vadd.xlane.f32.xlu1 %v2401_v20  ;;  %v2398_v35 = vsel %vm165_vm0, %v2394_v10, 0.0 }
 0xd40   :  { %2399 = vadd.xlane.f32.xlu0 %v2398_v35 }
 0xd50   :  { %v3628_v3 = vpop.f32.mrb[44].mxu0 }
 0xd51   :  { %v2284_v32 = vpop.f32.mrb[45].mxu0 }
 0xd52   :  { %3648 = vmatprep.mubr.msk.f32.mxu1 %vm165_vm0, %v2284_v32 }
 0xd53   :  { %3649 = vmatmul.mubr.msk.f32.gmra.mrb[40].mxu1 %vm165_vm0, %v3628_v3 }
 0xdcc   :  { %v2403_v6 = vpop.xlane.xlu1 %2402 }
 0xdcd   :  { %v2400_v33 = vpop.xlane.xlu0 %2399  ;;  %v2411_v58 = vmul.f32 0.015625, %v2403_v6 }
 0xdce   :  { %v2410_v36 = vmul.f32 0.015625, %v2400_v33 }
 0xdcf   :  { %v4832_v9 = vsub.f32 %v2395_v55, %v2411_v58 }
 0xdd0   :  { %v4834_v51 = vsub.f32 %v2394_v10, %v2410_v36 }
 0xdd1   :  { %v2419_v28 = vmul.f32 %v4832_v9, %v4832_v9 }
 0xdd2   :  { %v2418_v39 = vmul.f32 %v4834_v51, %v4834_v51 }
 0xdd3   :  { %v2425_v52 = vsel %vm165_vm0, %v2419_v28, 0.0 }
 0xdd4   :  { %v2422_v53 = vsel %vm165_vm0, %v2418_v39, 0.0  ;;  %v2987_v39 = vld [vmem:[%s5098_s4 + $0x108] sm:$0xff] }
 0xe26   :  { %v3650_v61 = vpop.f32.mrb[40].mxu1 }
 0xe27   :  { %v2391_v26 = vadd.f32 %v3650_v61, %v2296_v13  ;;  %v2385_v37 = vpop.f32.mrb[41].mxu1  ;;  %v4907_v61 = vrot.slane %v4735_v2, %v1102_v19 }
 0xe28   :  { %v2386_v60 = vadd.f32 %v2385_v37, %v2296_v13 }
 0xe29   :  { %v2397_v15 = vadd.f32 %v2391_v26, %v4718_v16  ;;  %v2973_v16 = vld [vmem:[%s5097_s3 + $0x98] sm:$0xff] }
 0xe2a   :  { %v2396_v62 = vadd.f32 %v2386_v60, %v4712_v5  ;;  %v2971_v5 = vld [vmem:[%s5097_s3 + $0x88] sm:$0xff]  ;;  %v4913_v60 = vrot.slane %v4735_v2, %v1110_v38  ;;  %v3002_v38 = vld [vmem:[%s5098_s4 + $0x180] sm:$0xff] }
 0xe2b   :  { %v2407_v45 = vsel %vm165_vm0, %v2397_v15, 0.0  ;;  %v3918_v54 = vpack.c.bf16 %v2973_v16, %v2971_v5 }
 0xe2c   :  { %2408 = vadd.xlane.f32.xlu1 %v2407_v45  ;;  %v2404_v46 = vsel %vm165_vm0, %v2396_v62, 0.0 }
 0xe2d   :  { %2405 = vadd.xlane.f32.xlu0 %v2404_v46  ;;  %3919 = vmatprep.subr.bf16.mxu0 %v3918_v54  ;;  %v2988_v54 = vld [vmem:[%s5098_s4 + $0x110] sm:$0xff] }
 0xe2e   :  { %3921 = vmatpush1.bf16.msra.mxu0 %v3920_v57  ;;  %v3007_v57 = vld [vmem:[%s5098_s4 + $0x1a8] sm:$0xff]  ;;  %v3940_v4 = vpack.c.bf16 %v2989_v50, %v2988_v54 }
 0xe2f   :  { %3923 = vmatprep.subr.bf16.mxu0 %v3922_v14  ;;  %v3942_v11 = vpack.c.bf16 %v3007_v57, %v3006_v25  ;;  %v2990_v14 = vld [vmem:[%s5098_s4 + $0x120] sm:$0xff] }
 0xe30   :  { %2426 = vadd.xlane.f32.xlu1 %v2425_v52  ;;  %v3004_v52 = vld [vmem:[%s5098_s4 + $0x190] sm:$0xff]  ;;  %v3944_v30 = vpack.c.bf16 %v2991_v17, %v2990_v14 }
 0xe31   :  { %2423 = vadd.xlane.f32.xlu0 %v2422_v53  ;;  %v3005_v53 = vld [vmem:[%s5098_s4 + $0x198] sm:$0xff] }
 0xe32   :  { %3925 = vmatpush1.bf16.msra.mxu0 %v3924_v56  ;;  %v3938_v16 = vpack.c.bf16 %v3005_v53, %v3004_v52  ;;  %v3008_v56 = vld [vmem:[%s5098_s4 + $0x1b0] sm:$0xff] }
 0xe33   :  { %3927 = vmatprep.subr.bf16.mxu0 %v3926_v7  ;;  %v3946_v31 = vpack.c.bf16 %v3009_v18, %v3008_v56  ;;  %v2992_v7 = vld [vmem:[%s5098_s4 + $0x130] sm:$0xff] }
 0xe34   :  { %v3948_v43 = vpack.c.bf16 %v2993_v29, %v2992_v7 }
 0xe36   :  { %3929 = vmatpush1.bf16.msra.mxu0 %v3928_v59  ;;  %v3010_v59 = vld [vmem:[%s5098_s4 + $0x1c0] sm:$0xff] }
 0xe37   :  { %3931 = vmatprep.subr.bf16.mxu0 %v3930_v49  ;;  %v3950_v48 = vpack.c.bf16 %v3011_v22, %v3010_v59  ;;  %v2994_v49 = vld [vmem:[%s5098_s4 + $0x140] sm:$0xff] }
 0xe38   :  { %v3952_v27 = vpack.c.bf16 %v2995_v34, %v2994_v49 }
 0xe3a   :  { %3933 = vmatpush1.bf16.msra.mxu0 %v3932_v63  ;;  %v3012_v63 = vld [vmem:[%s5098_s4 + $0x1d0] sm:$0xff] }
 0xeb9   :  { %v2409_v0 = vpop.xlane.xlu1 %2408 }
 0xeba   :  { %v2413_v12 = vmul.f32 0.015625, %v2409_v0  ;;  %v2406_v13 = vpop.xlane.xlu0 %2405  ;;  %v3013_v0 = vld [vmem:[%s5098_s4 + $0x1d8] sm:$0xff] }
 0xebb   :  { %v2412_v23 = vmul.f32 0.015625, %v2406_v13  ;;  %v2996_v13 = vld [vmem:[%s5098_s4 + $0x150] sm:$0xff] }
 0xebc   :  { %v4894_v8 = vsub.f32 %v2397_v15, %v2413_v12  ;;  %v3954_v12 = vpack.c.bf16 %v3013_v0, %v3012_v63 }
 0xebd   :  { %v4896_v40 = vsub.f32 %v2396_v62, %v2412_v23  ;;  %v2427_v24 = vpop.xlane.xlu1 %2426  ;;  %v2997_v23 = vld [vmem:[%s5098_s4 + $0x158] sm:$0xff] }
 0xebe   :  { %v2435_v55 = vmul.f32 0.015625, %v2427_v24  ;;  %v2424_v10 = vpop.xlane.xlu0 %2423  ;;  %v2421_v20 = vmul.f32 %v4894_v8, %v4894_v8  ;;  %v3956_v24 = vpack.c.bf16 %v2997_v23, %v2996_v13 }
 0xebf   :  { %v2434_v35 = vmul.f32 0.015625, %v2424_v10  ;;  %v2420_v3 = vmul.f32 %v4896_v40, %v4896_v40  ;;  %v3015_v10 = vld [vmem:[%s5098_s4 + $0x1e8] sm:$0xff] }
 0xec0   :  { %v2439_v32 = vadd.f32 1e-05, %v2435_v55  ;;  %v2431_v6 = vsel %vm165_vm0, %v2421_v20, 0.0  ;;  %v3014_v55 = vld [vmem:[%s5098_s4 + $0x1e0] sm:$0xff] }
 0xec1   :  { %v2438_v33 = vadd.f32 1e-05, %v2434_v35  ;;  %2432 = vadd.xlane.f32.xlu1 %v2431_v6  ;;  %v2428_v58 = vsel %vm165_vm0, %v2420_v3, 0.0  ;;  %v3958_v20 = vpack.c.bf16 %v3015_v10, %v3014_v55  ;;  %v2998_v35 = vld [vmem:[%s5098_s4 + $0x160] sm:$0xff]  ;;  %v2999_v3 = vld [vmem:[%s5098_s4 + $0x168] sm:$0xff]  ;;  %v3016_v6 = vld [vmem:[%s5098_s4 + $0x1f0] sm:$0xff] }
 0xec2   :  { %4009 = vrsqrt.f32 %v2439_v32  ;;  %2429 = vadd.xlane.f32.xlu0 %v2428_v58  ;;  %v3960_v32 = vpack.c.bf16 %v2999_v3, %v2998_v35 }
 0xec3   :  { %4011 = vrsqrt.f32 %v2438_v33  ;;  %v3017_v33 = vld [vmem:[%s5098_s4 + $0x1f8] sm:$0xff] }
 0xec4   :  { %v3962_v58 = vpack.c.bf16 %v3017_v33, %v3016_v6 }
 0xecc   :  { %v4010_v36 = vpop.eup %4009 }
 0xecd   :  { %v4012_v26 = vpop.eup %4011  ;;  %v2447_v15 = vmul.f32 %v4010_v36, %v4832_v9  ;;  %v3003_v9 = vld [vmem:[%s5098_s4 + $0x188] sm:$0xff]  ;;  %v3000_v36 = vld [vmem:[%s5098_s4 + $0x170] sm:$0xff] }
 0xece   :  { %v2446_v37 = vmul.f32 %v4012_v26, %v4834_v51  ;;  %v2986_v51 = vld [vmem:[%s5098_s4 + $0x100] sm:$0xff]  ;;  %v3934_v46 = vpack.c.bf16 %v3003_v9, %v3002_v38  ;;  %v3001_v26 = vld [vmem:[%s5098_s4 + $0x178] sm:$0xff] }
 0xecf   :  { %v2455_v28 = vmul.f32 %v4907_v61, %v2447_v15  ;;  %v3936_v5 = vpack.c.bf16 %v2987_v39, %v2986_v51 }
 0xed0   :  { %v2454_v62 = vmul.f32 %v4907_v61, %v2446_v37  ;;  %3935 = vmatprep.subr.bf16.mxu1 %v3934_v46  ;;  %v3964_v37 = vpack.c.bf16 %v3001_v26, %v3000_v36 }
 0xed1   :  { %v4925_v19 = vadd.f32 %v4913_v60, %v2455_v28  ;;  %3937 = vmatpush3.bf16.msra.mxu1 %v3936_v5 }
 0xed2   :  { %v4918_v45 = vadd.f32 %v4913_v60, %v2454_v62  ;;  %3939 = vmatprep.subr.bf16.mxu1 %v3938_v16 }
 0xed4   :  { %3057 = vmatmul.mubr.msk.f32.vlgmr.msra.gmra.mrb[46].mxu0 %vm165_vm0, %v4918_v45 }
 0xed5   :  { %2556 = vmatprep.mubr.f32.mxu0 %v4050_v47  ;;  %3941 = vmatpush3.bf16.msra.mxu1 %v3940_v4 }
 0xed6   :  { %3943 = vmatprep.subr.bf16.mxu1 %v3942_v11 }
 0xed8   :  { %3058 = vmatmul.mubr.msk.f32.gmra.mrb[48].mxu0 %vm165_vm0, %v4925_v19 }
 0xed9   :  { %2562 = vmatprep.mubr.f32.mxu0 %v4050_v47  ;;  %3945 = vmatpush3.bf16.msra.mxu1 %v3944_v30 }
 0xeda   :  { %3947 = vmatprep.subr.bf16.mxu1 %v3946_v31 }
 0xedd   :  { %3949 = vmatpush3.bf16.msra.mxu1 %v3948_v43 }
 0xede   :  { %3951 = vmatprep.subr.bf16.mxu1 %v3950_v48 }
 0xee1   :  { %3953 = vmatpush3.bf16.msra.mxu1 %v3952_v27 }
 0xee2   :  { %3955 = vmatprep.subr.bf16.mxu1 %v3954_v12 }
 0xee5   :  { %3957 = vmatpush3.bf16.msra.mxu1 %v3956_v24 }
 0xee6   :  { %3959 = vmatprep.subr.bf16.mxu1 %v3958_v20 }
 0xee9   :  { %3961 = vmatpush3.bf16.msra.mxu1 %v3960_v32 }
 0xeea   :  { %3963 = vmatprep.subr.bf16.mxu1 %v3962_v58 }
 0xeed   :  { %3965 = vmatpush3.bf16.msra.mxu1 %v3964_v37 }
 0xf4e   :  { %v2433_v15 = vpop.xlane.xlu1 %2432 }
 0xf4f   :  { %v2437_v62 = vmul.f32 0.015625, %v2433_v15  ;;  %v2430_v28 = vpop.xlane.xlu0 %2429 }
 0xf50   :  { %v2436_v38 = vmul.f32 0.015625, %v2430_v28 }
 0xf51   :  { %v2441_v9 = vadd.f32 1e-05, %v2437_v62 }
 0xf52   :  { %v2440_v51 = vadd.f32 1e-05, %v2436_v38 }
 0xf53   :  { %4013 = vrsqrt.f32 %v2441_v9 }
 0xf54   :  { %4015 = vrsqrt.f32 %v2440_v51 }
 0xf5d   :  { %v4014_v46 = vpop.eup %4013 }
 0xf5e   :  { %v4016_v39 = vpop.eup %4015  ;;  %v2449_v53 = vmul.f32 %v4014_v46, %v4894_v8  ;;  %v5044_v8 = vld [vmem:[%s5095_s5 + $0x30] sm:$0x3] }
 0xf5f   :  { %v2448_v52 = vmul.f32 %v4016_v39, %v4896_v40  ;;  %v3020_v40 = vld [vmem:[%s5095_s5 + $0x38] sm:$0x3] }
 0xf60   :  { %v2457_v54 = vmul.f32 %v4907_v61, %v2449_v53  ;;  %v2473_v25 = vrot.slane %v3020_v40, %v4218_v42 }
 0xf61   :  { %v2456_v5 = vmul.f32 %v4907_v61, %v2448_v52  ;;  %v2469_v61 = vrot.slane %v5044_v8, %v4218_v42 }
 0xf62   :  { %v5037_v50 = vadd.f32 %v4913_v60, %v2457_v54 }
 0xf63   :  { %v5030_v16 = vadd.f32 %v4913_v60, %v2456_v5 }
 0xf65   :  { %3059 = vmatmul.mubr.msk.f32.gmra.mrb[50].mxu0 %vm165_vm0, %v5030_v16 }
 0xf66   :  { %2568 = vmatprep.mubr.f32.mxu0 %v4050_v47 }
 0xf69   :  { %3060 = vmatmul.mubr.msk.f32.gmra.mrb[52].mxu0 %vm165_vm0, %v5037_v50 }
 0xf6a   :  { %3659 = vmatprep.mubr.msk.f32.mxu0 %vm4052_vm11, %v4050_v47 }
 0xfa7   :  { %v2552_v57 = vpop.f32.mrb[46].mxu0 }
 0xfa8   :  { %v2553_v60 = vadd.f32 %v2552_v57, %v2469_v61  ;;  %v2554_v4 = vpop.f32.mrb[47].mxu0 }
 0xfa9   :  { %v2555_v11 = vadd.f32 %v2554_v4, %v2473_v25 }
 0xfaa   :  { %v2583_v14 = vmul.f32 0.70710677, %v2553_v60  ;;  %v2575_v49 = vmul.f32 0.5, %v2553_v60 }
 0xfab   :  { %v2584_v17 = vmul.f32 0.70710677, %v2555_v11  ;;  %v2558_v30 = vpop.f32.mrb[48].mxu0  ;;  %v2576_v42 = vmul.f32 0.5, %v2555_v11 }
 0xfac   :  { %4017 = verf.f32 %v2583_v14  ;;  %v2559_v56 = vadd.f32 %v2558_v30, %v2469_v61  ;;  %v2560_v18 = vpop.f32.mrb[49].mxu0  ;;  %v2618_v14 = vrot.slane %v4735_v2, %v1267_v1 }
 0xfad   :  { %4019 = verf.f32 %v2584_v17  ;;  %v2561_v31 = vadd.f32 %v2560_v18, %v2473_v25 }
 0xfae   :  { %v2585_v7 = vmul.f32 0.70710677, %v2559_v56  ;;  %v2577_v24 = vmul.f32 0.5, %v2559_v56 }
 0xfaf   :  { %v2586_v29 = vmul.f32 0.70710677, %v2561_v31  ;;  %v2578_v13 = vmul.f32 0.5, %v2561_v31 }
 0xfb0   :  { %4021 = verf.f32 %v2585_v7 }
 0xfb1   :  { %4023 = verf.f32 %v2586_v29 }
 0xfb6   :  { %v4018_v43 = vpop.eup %4017 }
 0xfb7   :  { %v4020_v59 = vpop.eup %4019  ;;  %v2599_v22 = vadd.f32 1.0, %v4018_v43 }
 0xfb8   :  { %v2600_v48 = vadd.f32 1.0, %v4020_v59 }
 0xfb9   :  { %v2607_v0 = vmul.f32 %v2599_v22, %v2575_v49 }
 0xfba   :  { %v4022_v34 = vpop.eup %4021  ;;  %v2608_v27 = vmul.f32 %v2600_v48, %v2576_v42 }
 0xfbb   :  { %v4024_v63 = vpop.eup %4023  ;;  %v2601_v12 = vadd.f32 1.0, %v4022_v34 }
 0xfbc   :  { %v2602_v23 = vadd.f32 1.0, %v4024_v63  ;;  %2683 = vmatprep.mubr.f32.mxu1 %v2608_v27 }
 0xfbd   :  { %2684 = vmatmul.mubr.f32.vlgmr.msra.gmra.mrb[42].mxu1 %v2607_v0  ;;  %v2609_v10 = vmul.f32 %v2601_v12, %v2577_v24 }
 0xfbe   :  { %v2610_v55 = vmul.f32 %v2602_v23, %v2578_v13 }
 0xfc0   :  { %2688 = vmatprep.mubr.f32.mxu1 %v2610_v55 }
 0xfc1   :  { %2689 = vmatmul.mubr.f32.gmra.mrb[44].mxu1 %v2609_v10 }
0x1038   :  { %v2564_v20 = vpop.f32.mrb[50].mxu0 }
0x1039   :  { %v2565_v35 = vadd.f32 %v2564_v20, %v2469_v61  ;;  %v2566_v3 = vpop.f32.mrb[51].mxu0 }
0x103a   :  { %v2567_v32 = vadd.f32 %v2566_v3, %v2473_v25 }
0x103b   :  { %v2587_v6 = vmul.f32 0.70710677, %v2565_v35  ;;  %v2579_v39 = vmul.f32 0.5, %v2565_v35 }
0x103c   :  { %v2588_v33 = vmul.f32 0.70710677, %v2567_v32  ;;  %v2570_v58 = vpop.f32.mrb[52].mxu0  ;;  %v2580_v51 = vmul.f32 0.5, %v2567_v32 }
0x103d   :  { %4025 = verf.f32 %v2587_v6  ;;  %v2571_v36 = vadd.f32 %v2570_v58, %v2469_v61  ;;  %v2572_v26 = vpop.f32.mrb[53].mxu0  ;;  %v4051_v58 = vmov 0.0|0.0  }
0x103e   :  { %4027 = verf.f32 %v2588_v33  ;;  %v2573_v37 = vadd.f32 %v2572_v26, %v2473_v25  ;;  %3966 = vmatprep.subr.bf16.mxu0 %v4051_v58 }
0x103f   :  { %v2589_v15 = vmul.f32 0.70710677, %v2571_v36  ;;  %v2581_v60 = vmul.f32 0.5, %v2571_v36 }
0x1040   :  { %v2590_v62 = vmul.f32 0.70710677, %v2573_v37  ;;  %v2582_v57 = vmul.f32 0.5, %v2573_v37 }
0x1041   :  { %4029 = verf.f32 %v2589_v15 }
0x1042   :  { %4031 = verf.f32 %v2590_v62 }
0x1047   :  { %v4026_v28 = vpop.eup %4025 }
0x1048   :  { %v4028_v38 = vpop.eup %4027  ;;  %v2603_v9 = vadd.f32 1.0, %v4026_v28 }
0x1049   :  { %v2604_v46 = vadd.f32 1.0, %v4028_v38 }
0x104a   :  { %v2611_v40 = vmul.f32 %v2603_v9, %v2579_v39 }
0x104b   :  { %v4030_v52 = vpop.eup %4029  ;;  %v2612_v53 = vmul.f32 %v2604_v46, %v2580_v51 }
0x104c   :  { %v4032_v5 = vpop.eup %4031  ;;  %v2605_v54 = vadd.f32 1.0, %v4030_v52 }
0x104d   :  { %v2606_v61 = vadd.f32 1.0, %v4032_v5  ;;  %2693 = vmatprep.mubr.f32.mxu1 %v2612_v53 }
0x104e   :  { %2694 = vmatmul.mubr.f32.gmra.mrb[46].mxu1 %v2611_v40  ;;  %v2613_v4 = vmul.f32 %v2605_v54, %v2581_v60  ;;  %v2763_v40 = vrot.slane %v4735_v2, %v1412_v21 }
0x104f   :  { %v2614_v25 = vmul.f32 %v2606_v61, %v2582_v57  ;;  %v2771_v61 = vrot.slane %v5044_v8, %v4226_v44 }
0x1051   :  { %2698 = vmatprep.mubr.f32.mxu1 %v2614_v25 }
0x1052   :  { %2699 = vmatmul.mubr.f32.gmra.mrb[48].mxu1 %v2613_v4 }
0x1090   :  { %v3318_v11 = vpop.f32.mrb[42].mxu1 }
0x1091   :  { %v3319_v17 = vpop.f32.mrb[43].mxu1 }
0x1092   :  { %v3320_v30 = vadd.f32 %v3319_v17, %v3318_v11 }
0x1094   :  { %v2686_v56 = vadd.f32 %v3320_v30, %v2618_v14  ;;  %v3321_v18 = vpop.f32.mrb[44].mxu1 }
0x1095   :  { %v3322_v31 = vpop.f32.mrb[45].mxu1 }
0x1096   :  { %v3323_v7 = vadd.f32 %v3322_v31, %v3321_v18  ;;  %v2704_v29 = vadd.f32 %v2686_v56, %v4918_v45 }
0x1098   :  { %v2691_v43 = vadd.f32 %v3323_v7, %v2618_v14  ;;  %v2708_v59 = vsel %vm165_vm0, %v2704_v29, 0.0 }
0x1099   :  { %2709 = vadd.xlane.f32.xlu0 %v2708_v59 }
0x109a   :  { %v2705_v22 = vadd.f32 %v2691_v43, %v4925_v19 }
0x109c   :  { %v2711_v42 = vsel %vm165_vm0, %v2705_v22, 0.0 }
0x109d   :  { %2712 = vadd.xlane.f32.xlu1 %v2711_v42 }
0x1121   :  { %v3324_v48 = vpop.f32.mrb[46].mxu1 }
0x1122   :  { %v3325_v49 = vpop.f32.mrb[47].mxu1 }
0x1123   :  { %v3326_v1 = vadd.f32 %v3325_v49, %v3324_v48 }
0x1125   :  { %v2696_v34 = vadd.f32 %v3326_v1, %v2618_v14  ;;  %v3327_v27 = vpop.f32.mrb[48].mxu1 }
0x1126   :  { %v3328_v63 = vpop.f32.mrb[49].mxu1  ;;  %v2710_v0 = vpop.xlane.xlu0 %2709 }
0x1127   :  { %v3329_v12 = vadd.f32 %v3328_v63, %v3327_v27  ;;  %v2720_v13 = vmul.f32 0.015625, %v2710_v0  ;;  %v2706_v45 = vadd.f32 %v2696_v34, %v5030_v16 }
0x1129   :  { %v2701_v23 = vadd.f32 %v3329_v12, %v2618_v14  ;;  %v2724_v24 = vsub.f32 %v2704_v29, %v2720_v13  ;;  %v2714_v55 = vsel %vm165_vm0, %v2706_v45, 0.0 }
0x112a   :  { %v2713_v10 = vpop.xlane.xlu1 %2712  ;;  %2715 = vadd.xlane.f32.xlu0 %v2714_v55 }
0x112b   :  { %v2721_v19 = vmul.f32 0.015625, %v2713_v10  ;;  %v2707_v20 = vadd.f32 %v2701_v23, %v5037_v50  ;;  %v2728_v35 = vmul.f32 %v2724_v24, %v2724_v24 }
0x112d   :  { %v2725_v3 = vsub.f32 %v2705_v22, %v2721_v19  ;;  %v2717_v32 = vsel %vm165_vm0, %v2707_v20, 0.0  ;;  %v2732_v6 = vsel %vm165_vm0, %v2728_v35, 0.0 }
0x112e   :  { %2718 = vadd.xlane.f32.xlu1 %v2717_v32  ;;  %2733 = vadd.xlane.f32.xlu0 %v2732_v6 }
0x112f   :  { %v2729_v33 = vmul.f32 %v2725_v3, %v2725_v3 }
0x1131   :  { %v2735_v16 = vsel %vm165_vm0, %v2729_v33, 0.0 }
0x1132   :  { %2736 = vadd.xlane.f32.xlu1 %v2735_v16 }
0x11b7   :  { %v2716_v36 = vpop.xlane.xlu0 %2715 }
0x11b8   :  { %v2722_v26 = vmul.f32 0.015625, %v2716_v36  ;;  %v2798_v36 = vstv %s5100_s7 }
0x11ba   :  { %v2726_v37 = vsub.f32 %v2706_v45, %v2722_v26 }
0x11bb   :  { %v2719_v15 = vpop.xlane.xlu1 %2718  ;;  %v2734_v62 = vpop.xlane.xlu0 %2733 }
0x11bc   :  { %v2723_v50 = vmul.f32 0.015625, %v2719_v15  ;;  %v2744_v28 = vmul.f32 0.015625, %v2734_v62  ;;  %v2730_v38 = vmul.f32 %v2726_v37, %v2726_v37 }
0x11be   :  { %v2727_v9 = vsub.f32 %v2707_v20, %v2723_v50  ;;  %v2748_v51 = vadd.f32 1e-05, %v2744_v28  ;;  %v2738_v46 = vsel %vm165_vm0, %v2730_v38, 0.0 }
0x11bf   :  { %v2737_v39 = vpop.xlane.xlu1 %2736  ;;  %2739 = vadd.xlane.f32.xlu0 %v2738_v46 }
0x11c0   :  { %4033 = vrsqrt.f32 %v2748_v51  ;;  %v2745_v52 = vmul.f32 0.015625, %v2737_v39  ;;  %v2731_v53 = vmul.f32 %v2727_v9, %v2727_v9 }
0x11c2   :  { %v2749_v5 = vadd.f32 1e-05, %v2745_v52  ;;  %v2741_v54 = vsel %vm165_vm0, %v2731_v53, 0.0 }
0x11c3   :  { %2742 = vadd.xlane.f32.xlu1 %v2741_v54 }
0x11c4   :  { %4035 = vrsqrt.f32 %v2749_v5 }
0x11ca   :  { %v4034_v57 = vpop.eup %4033 }
0x11cb   :  { %v2756_v60 = vmul.f32 %v4034_v57, %v2724_v24 }
0x11cd   :  { %v2764_v25 = vmul.f32 %v2763_v40, %v2756_v60 }
0x11ce   :  { %v4036_v4 = vpop.eup %4035 }
0x11cf   :  { %v2772_v11 = vadd.f32 %v2771_v61, %v2764_v25  ;;  %v2757_v14 = vmul.f32 %v4036_v4, %v2725_v3 }
0x11d1   :  { %v2780_v17 = vmul.f32 0.70710677, %v2772_v11  ;;  %v2765_v30 = vmul.f32 %v2763_v40, %v2757_v14  ;;  %v2776_v29 = vmul.f32 0.5, %v2772_v11 }
0x11d3   :  { %v2773_v56 = vadd.f32 %v2771_v61, %v2765_v30  ;;  %4037 = verf.f32 %v2780_v17 }
0x11d5   :  { %v2781_v18 = vmul.f32 0.70710677, %v2773_v56  ;;  %v2777_v21 = vmul.f32 0.5, %v2773_v56 }
0x11d7   :  { %4039 = verf.f32 %v2781_v18 }
0x11dd   :  { %v4038_v31 = vpop.eup %4037 }
0x11de   :  { %v2788_v7 = vadd.f32 1.0, %v4038_v31 }
0x11e0   :  { %v2792_v43 = vmul.f32 %v2788_v7, %v2776_v29 }
0x11e1   :  { %v4040_v41 = vpop.eup %4039 }
0x11e2   :  { %v2789_v2 = vadd.f32 1.0, %v4040_v41 }
0x11e4   :  { %v2793_v59 = vmul.f32 %v2789_v2, %v2777_v21 }
0x11e6   :  { %v3967_v8 = vpack.c.bf16 %v2793_v59, %v2792_v43 }
0x11e8   :  { %3969 = vmatpush3.bf16.xpose.msk.msra.mxu0 %vm5074_vm10, %v3967_v8 }
0x11e9   :  { %3970 = vmatprep.subr.bf16.mxu0 %v4051_v58  ;;  %v2796_v58 = vld [vmem:[%s5099_s6] sm:$0x1] }
0x124c   :  { %v2740_v22 = vpop.xlane.xlu0 %2739 }
0x124d   :  { %v2746_v42 = vmul.f32 0.015625, %v2740_v22 }
0x124f   :  { %v2750_v48 = vadd.f32 1e-05, %v2746_v42 }
0x1250   :  { %v2743_v49 = vpop.xlane.xlu1 %2742 }
0x1251   :  { %4041 = vrsqrt.f32 %v2750_v48  ;;  %v2747_v1 = vmul.f32 0.015625, %v2743_v49 }
0x1253   :  { %v2751_v34 = vadd.f32 1e-05, %v2747_v1 }
0x1255   :  { %4043 = vrsqrt.f32 %v2751_v34 }
0x125b   :  { %v4042_v27 = vpop.eup %4041 }
0x125c   :  { %v2758_v63 = vmul.f32 %v4042_v27, %v2726_v37 }
0x125e   :  { %v2766_v0 = vmul.f32 %v2763_v40, %v2758_v63 }
0x125f   :  { %v4044_v12 = vpop.eup %4043 }
0x1260   :  { %v2774_v13 = vadd.f32 %v2771_v61, %v2766_v0  ;;  %v2759_v45 = vmul.f32 %v4044_v12, %v2727_v9 }
0x1262   :  { %v2782_v23 = vmul.f32 0.70710677, %v2774_v13  ;;  %v2767_v24 = vmul.f32 %v2763_v40, %v2759_v45  ;;  %v2778_v35 = vmul.f32 0.5, %v2774_v13 }
0x1264   :  { %4045 = verf.f32 %v2782_v23  ;;  %v2775_v55 = vadd.f32 %v2771_v61, %v2767_v24 }
0x1266   :  { %v2783_v10 = vmul.f32 0.70710677, %v2775_v55  ;;  %v2779_v3 = vmul.f32 0.5, %v2775_v55 }
0x1268   :  { %4047 = verf.f32 %v2783_v10 }
0x126e   :  { %v4046_v47 = vpop.eup %4045 }
0x126f   :  { %v2790_v19 = vadd.f32 1.0, %v4046_v47 }
0x1271   :  { %v2794_v6 = vmul.f32 %v2790_v19, %v2778_v35 }
0x1272   :  { %v4048_v20 = vpop.eup %4047 }
0x1273   :  { %v2791_v32 = vadd.f32 1.0, %v4048_v20 }
0x1275   :  { %v2795_v33 = vmul.f32 %v2791_v32, %v2779_v3 }
0x1277   :  { %v3971_v16 = vpack.c.bf16 %v2795_v33, %v2794_v6 }
0x1279   :  { %3973 = vmatpush3.bf16.xpose.msk.msra.mxu0 %vm5074_vm10, %v3971_v16 }
0x1280   :  { %3660 = vmatmul.mubr.msk.f32.vlgmr.msra.gmra.mrb[54].mxu0 %vm165_vm0, %v2796_v58 }
0x1353   :  { %v2880_v26 = vpop.f32.mrb[54].mxu0 }
0x1354   :  { %v2881_v37 = vadd.f32 %v2880_v26, %v2798_v36  ;;  %v3661_v15 = vpop.f32.mrb[55].mxu0 }
0x1356   :  { %2885 = vst.msk [vmem:[%s5101_s8] sm:$0x1] %vm2884_vm12, %v2881_v37 }

</bundles_post_ra>
